<compile_context>
chip_gen: v7x
topology: tpu7x:2x2x1
jax: 0.10.0
libtpu: 0.0.40
codegen_flags: <defaults>
</compile_context>

<pallas_src>
import functools

import jax
import jax.numpy as jnp
from jax.experimental import pallas as pl
from jax.experimental.pallas import tpu as pltpu


# PyTorch topology:
#   Linear(11,128) Tanh Linear(128,256) Tanh Linear(256,128) Linear(128,64)
#   Linear(64,64) Drop Linear(64,64) Drop Linear(64,64) Drop Linear(64,64)
#   Drop Linear(64,1) ReLU  -> squeeze(-1)
LAYER_DIMS = [(11, 128), (128, 256), (256, 128), (128, 64),
              (64, 64), (64, 64), (64, 64), (64, 64), (64, 1)]
TANH_AFTER = {0, 1}     # tanh follows the first two linears
FOLD_START = 2          # layers [2..8] are activation-free -> fold exactly


def init_params(key):
    """PyTorch-style U(-1/sqrt(fan_in), 1/sqrt(fan_in)) init; W stored (in, out)."""
    params = []
    for (fan_in, fan_out) in LAYER_DIMS:
        key, kw, kb = jax.random.split(key, 3)
        bound = 1.0 / jnp.sqrt(jnp.float32(fan_in))
        w = jax.random.uniform(kw, (fan_in, fan_out), jnp.float32, -bound, bound)
        b = jax.random.uniform(kb, (fan_out,), jnp.float32, -bound, bound)
        params.append((w, b))
    return params


def fold_params(params, mm_dtype=jnp.bfloat16):
    """Fold the activation-free tail (dropout == identity at inference) into a
    single exact (256->1) affine map.

    Returns (w0, b0, w1, b1, wt, bt):
      w0 (11,128)  f32      -- layer 0 stays f32 (K=11 is tiny; exact input path)
      b0 (128,1)   f32
      w1 (256,128) mm_dtype -- the big MXU matmul (bf16 by default)
      b1 (256,1)   f32
      wt (256,1)   f32      -- folded tail, evaluated on the VPU in f32
      bt (1,1)     f32
    """
    (w0, b0), (w1, b1) = params[0], params[1]
    w_fold, b_fold = params[FOLD_START]
    for w, b in params[FOLD_START + 1:]:
        b_fold = b_fold @ w + b
        w_fold = w_fold @ w                           # ends up (256, 1)
    return (
        w0.astype(jnp.float32),                       # (11, 128)
        b0.reshape(-1, 1).astype(jnp.float32),        # (128, 1)
        w1.T.astype(mm_dtype),                        # (256, 128)
        b1.reshape(-1, 1).astype(jnp.float32),        # (256, 1)
        w_fold.astype(jnp.float32),                   # (256, 1)
        b_fold.reshape(1, 1).astype(jnp.float32),     # (1, 1)
    )


def mlp_kernel(x_ref, w0_ref, b0_ref, w1_ref, b1_ref, wt_ref, bt_ref, out_ref,
               *, act_dtype):
    """One batch tile.  x_ref is (TB, 11) batch-major; out_ref is (1, TB)."""
    mm_dtype = w1_ref.dtype

    # Layer 0 (K=11, f32) batch-major on the MXU, then one tile-aligned
    # transpose (XLU has slack) to go feature-major for the rest of the net.
    h0 = jnp.dot(x_ref[...], w0_ref[...],
                 preferred_element_type=jnp.float32)              # (TB, 128)
    h = h0.T + b0_ref[...]                                        # (128, TB)
    h = jnp.tanh(h.astype(act_dtype)).astype(mm_dtype)

    # Layer 1: the big matmul (K=128) in bf16 with f32 accumulation.
    h = jnp.dot(w1_ref[...], h,
                preferred_element_type=jnp.float32) + b1_ref[...]  # (256, TB)
    h = jnp.tanh(h.astype(act_dtype))

    # Folded 256->1 tail: f32 VPU multiply + sublane reduction (off the MXU).
    y = jnp.sum(wt_ref[...] * h.astype(jnp.float32),
                axis=0, keepdims=True) + bt_ref[...]               # (1, TB)
    out_ref[...] = jnp.maximum(y, 0.0).astype(out_ref.dtype)


def _round_up(v, m):
    return -(-v // m) * m


def _choose_tile_b(batch, requested):
    """Batch tile: multiple of 256, <= requested, and (when the batch allows)
    small enough that the 'parallel' grid has >= 2 tiles (v7x has 2 TCs)."""
    requested = max(256, (requested // 256) * 256)
    if batch <= 256:
        return 256
    two_tiles = _round_up(-(-batch // 2), 256)   # round_up(ceil(B/2), 256)
    return min(requested, two_tiles)


@functools.partial(jax.jit, static_argnames=("tile_b", "act_dtype"))
def mlp_forward(x, folded, *, tile_b=2048, act_dtype=jnp.float32):
    """x: (B, 11) f32 -> (B,) f32 (matches Model.forward + squeeze(-1)).

    tile_b: requested batch tile (rounded down to a multiple of 256, clamped so
    the grid has >= 2 parallel tiles when B allows it).
    act_dtype: dtype for bias-add/tanh (bf16 on v6e/v7x, f32 elsewhere).
    """
    B, F = x.shape
    tb = _choose_tile_b(B, tile_b)
    num_tiles = pl.cdiv(B, tb)
    Bp = num_tiles * tb
    if Bp != B:
        # Pad only the batch axis (zeros); skipped entirely when B divides tb.
        x = jnp.pad(x, ((0, Bp - B), (0, 0)))

    in_specs = [pl.BlockSpec((tb, F), lambda i: (i, 0))]
    for p in folded:
        # Tiny constant operands: full-array blocks, resident across the grid.
        in_specs.append(pl.BlockSpec(p.shape, lambda i: (0, 0)))

    out = pl.pallas_call(
        functools.partial(mlp_kernel, act_dtype=act_dtype),
        out_shape=jax.ShapeDtypeStruct((1, Bp), jnp.float32),
        grid=(num_tiles,),
        in_specs=in_specs,
        out_specs=pl.BlockSpec((1, tb), lambda i: (0, i)),
        compiler_params=pltpu.CompilerParams(
            dimension_semantics=("parallel",)),
    )(x, *folded)

    return out[0, :B]


def mlp_reference(x, params):
    """Unfused f32 layer-by-layer reference (PyTorch eval semantics)."""
    h = x
    for i, (w, b) in enumerate(params):
        h = h @ w + b
        if i in TANH_AFTER:
            h = jnp.tanh(h)
    return jnp.maximum(h, 0.0)[:, 0]


def _pick_act_dtype():
    """bf16 bias/tanh only where the VPU/EUP support it (v6e/v7x)."""
    try:
        kind = jax.devices()[0].device_kind.lower()
    except Exception:
        return jnp.float32
    if "v6" in kind or "v7" in kind or "7x" in kind:
        return jnp.bfloat16
    return jnp.float32


if __name__ == "__main__":
    key = jax.random.PRNGKey(0)
    kx, kx2, kp = jax.random.split(key, 3)

    params = init_params(kp)

    # 1) Small batch, all-f32 path, single tile -> tight tolerance.
    x_small = jax.random.normal(kx, (8, 11), jnp.float32)
    folded_f32 = fold_params(params, mm_dtype=jnp.float32)
    y = jax.block_until_ready(
        mlp_forward(x_small, folded_f32, tile_b=256, act_dtype=jnp.float32))
    y_ref = mlp_reference(x_small, params)
    assert y.shape == (8,), y.shape
    assert jnp.allclose(y, y_ref, atol=2e-3, rtol=2e-3), (y, y_ref)

    # 2) bf16-MXU path, ragged batch, 2-tile 'parallel' grid (600 -> 2 x 512).
    act = _pick_act_dtype()
    x_big = jax.random.normal(kx2, (600, 11), jnp.float32)
    folded_bf16 = fold_params(params, mm_dtype=jnp.bfloat16)
    y2 = jax.block_until_ready(mlp_forward(x_big, folded_bf16, act_dtype=act))
    y2_ref = mlp_reference(x_big, params)
    assert y2.shape == (600,), y2.shape
    assert jnp.allclose(y2, y2_ref, atol=3e-2, rtol=3e-2), (
        float(jnp.max(jnp.abs(y2 - y2_ref))))

    print("KERNEL_OK")
</pallas_src>

<mosaic_0001>
module attributes {stable_mosaic.version = 11 : i64} {
  func.func @mlp_kernel(%arg0: i32, %arg1: memref<256x11xf32, #tpu.memory_space<vmem>>, %arg2: memref<11x128xf32, #tpu.memory_space<vmem>>, %arg3: memref<128x1xf32, #tpu.memory_space<vmem>>, %arg4: memref<256x128xf32, #tpu.memory_space<vmem>>, %arg5: memref<256x1xf32, #tpu.memory_space<vmem>>, %arg6: memref<256x1xf32, #tpu.memory_space<vmem>>, %arg7: memref<1x1xf32, #tpu.memory_space<vmem>>, %arg8: memref<1x256xf32, #tpu.memory_space<vmem>>) attributes {dimension_semantics = [#tpu.dimension_semantics<parallel>], iteration_bounds = array<i64: 1>, scalar_prefetch = 0 : i64, scratch_operands = 0 : i64, tpu.core_type = #tpu.core_type<tc>, window_params = [{transform_indices = @transform_0, window_bounds = array<i64: 256, 11>}, {pipeline_mode = #tpu.pipeline_mode<synchronous>, transform_indices = @transform_1, window_bounds = array<i64: 11, 128>}, {pipeline_mode = #tpu.pipeline_mode<synchronous>, transform_indices = @transform_2, window_bounds = array<i64: 128, 1>}, {pipeline_mode = #tpu.pipeline_mode<synchronous>, transform_indices = @transform_3, window_bounds = array<i64: 256, 128>}, {pipeline_mode = #tpu.pipeline_mode<synchronous>, transform_indices = @transform_4, window_bounds = array<i64: 256, 1>}, {pipeline_mode = #tpu.pipeline_mode<synchronous>, transform_indices = @transform_5, window_bounds = array<i64: 256, 1>}, {pipeline_mode = #tpu.pipeline_mode<synchronous>, transform_indices = @transform_6, window_bounds = array<i64: 1, 1>}, {transform_indices = @transform_7, window_bounds = array<i64: 1, 256>}]} {
    %c0 = arith.constant 0 : index
    %c0_0 = arith.constant 0 : index
    %0 = vector.load %arg1[%c0, %c0_0] : memref<256x11xf32, #tpu.memory_space<vmem>>, vector<256x11xf32>
    %c0_1 = arith.constant 0 : index
    %c0_2 = arith.constant 0 : index
    %1 = vector.load %arg2[%c0_1, %c0_2] : memref<11x128xf32, #tpu.memory_space<vmem>>, vector<11x128xf32>
    %cst = arith.constant dense<0.000000e+00> : vector<256x128xf32>
    %2 = tpu.matmul %0, %1, %cst {dimension_numbers = #tpu.dot_dimension_numbers<[1], [0], [0], [1], [0, 0, 1, 1], [], []>} : vector<256x11xf32>, vector<11x128xf32>, vector<256x128xf32> -> vector<256x128xf32>
    %3 = tpu.transpose %2, [1, 0] : vector<256x128xf32> -> vector<128x256xf32>
    %c0_3 = arith.constant 0 : index
    %c0_4 = arith.constant 0 : index
    %4 = vector.load %arg3[%c0_3, %c0_4] : memref<128x1xf32, #tpu.memory_space<vmem>>, vector<128x1xf32>
    %5 = vector.broadcast %4 : vector<128x1xf32> to vector<128x256xf32>
    %6 = arith.addf %3, %5 : vector<128x256xf32>
    %7 = math.tanh %6 : vector<128x256xf32>
    %c0_5 = arith.constant 0 : index
    %c0_6 = arith.constant 0 : index
    %8 = vector.load %arg4[%c0_5, %c0_6] : memref<256x128xf32, #tpu.memory_space<vmem>>, vector<256x128xf32>
    %cst_7 = arith.constant dense<0.000000e+00> : vector<256x256xf32>
    %9 = tpu.matmul %8, %7, %cst_7 {dimension_numbers = #tpu.dot_dimension_numbers<[1], [0], [0], [1], [0, 0, 1, 1], [], []>} : vector<256x128xf32>, vector<128x256xf32>, vector<256x256xf32> -> vector<256x256xf32>
    %c0_8 = arith.constant 0 : index
    %c0_9 = arith.constant 0 : index
    %10 = vector.load %arg5[%c0_8, %c0_9] : memref<256x1xf32, #tpu.memory_space<vmem>>, vector<256x1xf32>
    %11 = vector.broadcast %10 : vector<256x1xf32> to vector<256x256xf32>
    %12 = arith.addf %9, %11 : vector<256x256xf32>
    %13 = math.tanh %12 : vector<256x256xf32>
    %c0_10 = arith.constant 0 : index
    %c0_11 = arith.constant 0 : index
    %14 = vector.load %arg6[%c0_10, %c0_11] : memref<256x1xf32, #tpu.memory_space<vmem>>, vector<256x1xf32>
    %15 = vector.broadcast %14 : vector<256x1xf32> to vector<256x256xf32>
    %16 = arith.mulf %15, %13 : vector<256x256xf32>
    %cst_12 = arith.constant dense<0.000000e+00> : vector<256xf32>
    %17 = vector.multi_reduction <add>, %16, %cst_12 [0] : vector<256x256xf32> to vector<256xf32>
    %18 = vector.shape_cast %17 : vector<256xf32> to vector<1x256xf32>
    %c0_13 = arith.constant 0 : index
    %c0_14 = arith.constant 0 : index
    %19 = vector.load %arg7[%c0_13, %c0_14] : memref<1x1xf32, #tpu.memory_space<vmem>>, vector<1x1xf32>
    %20 = vector.broadcast %19 : vector<1x1xf32> to vector<1x256xf32>
    %21 = arith.addf %18, %20 : vector<1x256xf32>
    %cst_15 = arith.constant 0.000000e+00 : f32
    %22 = vector.broadcast %cst_15 : f32 to vector<1x256xf32>
    %23 = arith.maximumf %21, %22 : vector<1x256xf32>
    %c0_16 = arith.constant 0 : index
    %c0_17 = arith.constant 0 : index
    %24 = vector.load %arg8[%c0_16, %c0_17] : memref<1x256xf32, #tpu.memory_space<vmem>>, vector<1x256xf32>
    tpu.vector_store %arg8[%c0_16, %c0_17], %23 {strides = array<i32>} : memref<1x256xf32, #tpu.memory_space<vmem>>, vector<1x256xf32>,
    return
  }
  func.func @transform_0(%arg0: i32) -> (i32, i32) {
    %c0_i32 = arith.constant 0 : i32
    %c0_i32_0 = arith.constant 0 : i32
    return %arg0, %c0_i32 : i32, i32
  }
  func.func @transform_1(%arg0: i32) -> (i32, i32) {
    %c0_i32 = arith.constant 0 : i32
    %c0_i32_0 = arith.constant 0 : i32
    %c0_i32_1 = arith.constant 0 : i32
    return %c0_i32, %c0_i32_0 : i32, i32
  }
  func.func @transform_2(%arg0: i32) -> (i32, i32) {
    %c0_i32 = arith.constant 0 : i32
    %c0_i32_0 = arith.constant 0 : i32
    %c0_i32_1 = arith.constant 0 : i32
    return %c0_i32, %c0_i32_0 : i32, i32
  }
  func.func @transform_3(%arg0: i32) -> (i32, i32) {
    %c0_i32 = arith.constant 0 : i32
    %c0_i32_0 = arith.constant 0 : i32
    %c0_i32_1 = arith.constant 0 : i32
    return %c0_i32, %c0_i32_0 : i32, i32
  }
  func.func @transform_4(%arg0: i32) -> (i32, i32) {
    %c0_i32 = arith.constant 0 : i32
    %c0_i32_0 = arith.constant 0 : i32
    %c0_i32_1 = arith.constant 0 : i32
    return %c0_i32, %c0_i32_0 : i32, i32
  }
  func.func @transform_5(%arg0: i32) -> (i32, i32) {
    %c0_i32 = arith.constant 0 : i32
    %c0_i32_0 = arith.constant 0 : i32
    %c0_i32_1 = arith.constant 0 : i32
    return %c0_i32, %c0_i32_0 : i32, i32
  }
  func.func @transform_6(%arg0: i32) -> (i32, i32) {
    %c0_i32 = arith.constant 0 : i32
    %c0_i32_0 = arith.constant 0 : i32
    %c0_i32_1 = arith.constant 0 : i32
    return %c0_i32, %c0_i32_0 : i32, i32
  }
  func.func @transform_7(%arg0: i32) -> (i32, i32) {
    %c0_i32 = arith.constant 0 : i32
    %c0_i32_0 = arith.constant 0 : i32
    return %c0_i32, %arg0 : i32, i32
  }
}

</mosaic_0001>

<bundles_post_ra>
// kernel: mlp_forward.1
= control target key start
LH: loop header
LB: loop body
LE: loop exit
PB: predicated region body
PF: predicated region fallthrough
CT: control target
= control target key end

     0   :  { %vm159_vm0 = vcmask 1042432   ;;  %vm62_vm1 = vcmask 89088   ;;  %vm1899_vm2 = vmmov 1   ;;  %v1900_v2 = vmov 0   ;;  %s2814_s1 = inlined_call_operand.vmem [shape: f32[11,128], index: 1, kind: input, shape index: {}]   ;;  %s2815_s0 = inlined_call_operand.vmem [shape: f32[256,11], index: 0, kind: input, shape index: {}]   ;;  %s2816_s2 = inlined_call_operand.vmem [shape: f32[128,1], index: 2, kind: input, shape index: {}]   ;;  %s2817_s4 = inlined_call_operand.vmem [shape: f32[256,1], index: 4, kind: input, shape index: {}]   ;;  %s2818_s5 = inlined_call_operand.vmem [shape: f32[256,1], index: 5, kind: input, shape index: {}]   ;;  %s2819_s6 = inlined_call_operand.<no memory space> [shape: f32[1,1], index: 6, kind: input, shape index: {}]   ;;  %s2820_s3 = inlined_call_operand.vmem [shape: f32[256,128], index: 3, kind: input, shape index: {}]   ;;  %s2821_s7 = inlined_call_operand.vmem [shape: f32[1,256], index: 7, kind: output, shape index: {}]  }
   0x1   :  { %v60_v0 = vld [vmem:[%s2814_s1] sm:$0xff]  ;;  %v61_v1 = vld [vmem:[%s2814_s1 + $0x8] sm:$0x7]  ;;  %vm1648_vm3 = vmpackc.low %vm159_vm0, %vm1899_vm2  ;;  %1706 = vset.pattern.permute.xlu1 %v1900_v2  ;;  %1705 = vset.pattern.permute.xlu0 %v1900_v2 }
   0x2   :  { %v1647_v3 = vpack.c.bf16 %v61_v1, %v60_v0  ;;  %v28_v4 = vld [vmem:[%s2815_s0] sm:$0xff]  ;;  %v29_v5 = vld [vmem:[%s2815_s0 + $0x8] sm:$0xff]  ;;  %v30_v6 = vld [vmem:[%s2815_s0 + $0x10] sm:$0xff] }
   0x3   :  { %1599 = vmatprep.mubr.msk.f32.mxu0 %vm62_vm1, %v28_v4  ;;  %v31_v7 = vld [vmem:[%s2815_s0 + $0x18] sm:$0xff]  ;;  %v32_v8 = vld [vmem:[%s2815_s0 + $0x20] sm:$0xff]  ;;  %v454_v9 = vld [vmem:[%s2816_s2 + $0x10] sm:$0xff] }
   0x4   :  { %1649 = vmatprep.subr.msk.bf16.mxu0 %vm1648_vm3, %v1647_v3  ;;  %v33_v10 = vld [vmem:[%s2815_s0 + $0x28] sm:$0xff]  ;;  %480 = vperm.xlu1 %1706, %v454_v9   ;;  %v34_v11 = vld [vmem:[%s2815_s0 + $0x30] sm:$0xff]  ;;  %v455_v12 = vld [vmem:[%s2816_s2 + $0x18] sm:$0xff] }
   0x5   :  { %1652 = vmatpush3.bf16.msk.msra.mxu0 %vm1648_vm3, %v1647_v3  ;;  %v452_v13 = vld [vmem:[%s2816_s2] sm:$0xff]  ;;  %v35_v14 = vld [vmem:[%s2815_s0 + $0x38] sm:$0xff]  ;;  %v453_v15 = vld [vmem:[%s2816_s2 + $0x8] sm:$0xff] }
   0x6   :  { %470 = vperm.xlu0 %1705, %v452_v13   ;;  %v36_v16 = vld [vmem:[%s2815_s0 + $0x40] sm:$0xff]  ;;  %v457_v17 = vld [vmem:[%s2816_s2 + $0x28] sm:$0xff]  ;;  %v38_v20 = vld [vmem:[%s2815_s0 + $0x50] sm:$0xff] }
   0x7   :  { %v37_v18 = vld [vmem:[%s2815_s0 + $0x48] sm:$0xff]  ;;  %v456_v19 = vld [vmem:[%s2816_s2 + $0x20] sm:$0xff]  ;;  %v459_v21 = vld [vmem:[%s2816_s2 + $0x38] sm:$0xff] }
   0x8   :  { %1600 = vmatmul.mubr.msk.f32.vlgmr.msra.gmra.mrb[0].mxu0 %vm62_vm1, %v29_v5  ;;  %485 = vperm.xlu1 %1706, %v455_v12   ;;  %v39_v22 = vld [vmem:[%s2815_s0 + $0x58] sm:$0xff]  ;;  %v458_v23 = vld [vmem:[%s2816_s2 + $0x30] sm:$0xff]  ;;  %v40_v24 = vld [vmem:[%s2815_s0 + $0x60] sm:$0xff] }
   0x9   :  { %1602 = vmatprep.mubr.msk.f32.mxu0 %vm62_vm1, %v30_v6  ;;  %v461_v25 = vld [vmem:[%s2816_s2 + $0x48] sm:$0xff]  ;;  %v460_v27 = vld [vmem:[%s2816_s2 + $0x40] sm:$0xff]  ;;  %v42_v28 = vld [vmem:[%s2815_s0 + $0x70] sm:$0xff] }
   0xa   :  { %475 = vperm.xlu0 %1705, %v453_v15   ;;  %v41_v26 = vld [vmem:[%s2815_s0 + $0x68] sm:$0xff]  ;;  %v463_v29 = vld [vmem:[%s2816_s2 + $0x58] sm:$0xff]  ;;  %v462_v31 = vld [vmem:[%s2816_s2 + $0x50] sm:$0xff] }
   0xb   :  { %v43_v30 = vld [vmem:[%s2815_s0 + $0x78] sm:$0xff]  ;;  %v44_v32 = vld [vmem:[%s2815_s0 + $0x80] sm:$0xff]  ;;  %v465_v33 = vld [vmem:[%s2816_s2 + $0x68] sm:$0xff] }
   0xc   :  { %1603 = vmatmul.mubr.msk.f32.gmra.mrb[2].mxu0 %vm62_vm1, %v31_v7  ;;  %495 = vperm.xlu1 %1706, %v457_v17   ;;  %v45_v34 = vld [vmem:[%s2815_s0 + $0x88] sm:$0xff]  ;;  %v464_v35 = vld [vmem:[%s2816_s2 + $0x60] sm:$0xff]  ;;  %v46_v36 = vld [vmem:[%s2815_s0 + $0x90] sm:$0xff] }
   0xd   :  { %1605 = vmatprep.mubr.msk.f32.mxu0 %vm62_vm1, %v32_v8  ;;  %v466_v37 = vld [vmem:[%s2816_s2 + $0x70] sm:$0xff]  ;;  %v47_v38 = vld [vmem:[%s2815_s0 + $0x98] sm:$0xff]  ;;  %v48_v39 = vld [vmem:[%s2815_s0 + $0xa0] sm:$0xff] }
   0xe   :  { %490 = vperm.xlu0 %1705, %v456_v19   ;;  %v467_v40 = vld [vmem:[%s2816_s2 + $0x78] sm:$0xff]  ;;  %v49_v41 = vld [vmem:[%s2815_s0 + $0xa8] sm:$0xff]  ;;  %v50_v42 = vld [vmem:[%s2815_s0 + $0xb0] sm:$0xff] }
   0xf   :  { %v51_v43 = vld [vmem:[%s2815_s0 + $0xb8] sm:$0xff]  ;;  %v52_v44 = vld [vmem:[%s2815_s0 + $0xc0] sm:$0xff]  ;;  %v53_v45 = vld [vmem:[%s2815_s0 + $0xc8] sm:$0xff] }
  0x10   :  { %1606 = vmatmul.mubr.msk.f32.gmra.mrb[4].mxu0 %vm62_vm1, %v33_v10  ;;  %505 = vperm.xlu1 %1706, %v459_v21   ;;  %v54_v46 = vld [vmem:[%s2815_s0 + $0xd0] sm:$0xff]  ;;  %v55_v47 = vld [vmem:[%s2815_s0 + $0xd8] sm:$0xff]  ;;  %v56_v48 = vld [vmem:[%s2815_s0 + $0xe0] sm:$0xff] }
  0x11   :  { %1608 = vmatprep.mubr.msk.f32.mxu0 %vm62_vm1, %v34_v11  ;;  %v57_v49 = vld [vmem:[%s2815_s0 + $0xe8] sm:$0xff]  ;;  %v58_v50 = vld [vmem:[%s2815_s0 + $0xf0] sm:$0xff]  ;;  %v59_v51 = vld [vmem:[%s2815_s0 + $0xf8] sm:$0xff] }
  0x12   :  { %500 = vperm.xlu0 %1705, %v458_v23  }
  0x14   :  { %1609 = vmatmul.mubr.msk.f32.gmra.mrb[6].mxu0 %vm62_vm1, %v35_v14  ;;  %515 = vperm.xlu1 %1706, %v461_v25  }
  0x15   :  { %1611 = vmatprep.mubr.msk.f32.mxu0 %vm62_vm1, %v36_v16 }
  0x16   :  { %510 = vperm.xlu0 %1705, %v460_v27   ;;  %v653_v27 = vld [vmem:[%s2817_s4 + $0x48] sm:$0xff] }
  0x18   :  { %1612 = vmatmul.mubr.msk.f32.gmra.mrb[8].mxu0 %vm62_vm1, %v37_v18  ;;  %525 = vperm.xlu1 %1706, %v463_v29   ;;  %v655_v29 = vld [vmem:[%s2817_s4 + $0x58] sm:$0xff] }
  0x19   :  { %1614 = vmatprep.mubr.msk.f32.mxu0 %vm62_vm1, %v38_v20 }
  0x1a   :  { %520 = vperm.xlu0 %1705, %v462_v31   ;;  %v657_v31 = vld [vmem:[%s2817_s4 + $0x68] sm:$0xff] }
  0x1c   :  { %1615 = vmatmul.mubr.msk.f32.gmra.mrb[10].mxu0 %vm62_vm1, %v39_v22  ;;  %535 = vperm.xlu1 %1706, %v465_v33   ;;  %v645_v22 = vld [vmem:[%s2817_s4 + $0x8] sm:$0xff]  ;;  %v1901_v33 = vmov 0.0  }
  0x1d   :  { %1617 = vmatprep.mubr.msk.f32.mxu0 %vm62_vm1, %v40_v24  ;;  %v649_v24 = vld [vmem:[%s2817_s4 + $0x28] sm:$0xff]  ;;  %966 = vmatprep.mubr.f32.mxu1 %v1901_v33 }
  0x1e   :  { %530 = vperm.xlu0 %1705, %v464_v35   ;;  %v1157_v35 = vld [vmem:[%s2818_s5] sm:$0xff] }
  0x20   :  { %1618 = vmatmul.mubr.msk.f32.gmra.mrb[12].mxu0 %vm62_vm1, %v41_v26  ;;  %540 = vperm.xlu1 %1706, %v466_v37   ;;  %v651_v26 = vld [vmem:[%s2817_s4 + $0x38] sm:$0xff]  ;;  %v1159_v37 = vld [vmem:[%s2818_s5 + $0x10] sm:$0xff] }
  0x21   :  { %1620 = vmatprep.mubr.msk.f32.mxu0 %vm62_vm1, %v42_v28 }
  0x24   :  { %1621 = vmatmul.mubr.msk.f32.gmra.mrb[14].mxu0 %vm62_vm1, %v43_v30  ;;  %545 = vperm.xlu1 %1706, %v467_v40  }
  0x25   :  { %1623 = vmatprep.mubr.msk.f32.mxu0 %vm62_vm1, %v44_v32  ;;  %v659_v32 = vld [vmem:[%s2817_s4 + $0x78] sm:$0xff] }
  0x28   :  { %1624 = vmatmul.mubr.msk.f32.gmra.mrb[16].mxu0 %vm62_vm1, %v45_v34 }
  0x29   :  { %1626 = vmatprep.mubr.msk.f32.mxu0 %vm62_vm1, %v46_v36 }
  0x2c   :  { %1627 = vmatmul.mubr.msk.f32.gmra.mrb[18].mxu0 %vm62_vm1, %v47_v38 }
  0x2d   :  { %1629 = vmatprep.mubr.msk.f32.mxu0 %vm62_vm1, %v48_v39  ;;  %v1161_v39 = vld [vmem:[%s2818_s5 + $0x20] sm:$0xff] }
  0x30   :  { %1630 = vmatmul.mubr.msk.f32.gmra.mrb[20].mxu0 %vm62_vm1, %v49_v41 }
  0x31   :  { %1632 = vmatprep.mubr.msk.f32.mxu0 %vm62_vm1, %v50_v42  ;;  %v1163_v42 = vld [vmem:[%s2818_s5 + $0x30] sm:$0xff] }
  0x34   :  { %1633 = vmatmul.mubr.msk.f32.gmra.mrb[22].mxu0 %vm62_vm1, %v51_v43 }
  0x35   :  { %1635 = vmatprep.mubr.msk.f32.mxu0 %vm62_vm1, %v52_v44  ;;  %v644_v44 = vld [vmem:[%s2817_s4] sm:$0xff] }
  0x38   :  { %1636 = vmatmul.mubr.msk.f32.gmra.mrb[24].mxu0 %vm62_vm1, %v53_v45  ;;  %v12_v45 = vstv %s2819_s6 }
  0x39   :  { %1638 = vmatprep.mubr.msk.f32.mxu0 %vm62_vm1, %v54_v46  ;;  %v1165_v46 = vld [vmem:[%s2818_s5 + $0x40] sm:$0xff]  ;;  %13 = vst [vmem:[#allocation2] sm:$0x1] %v12_v45 }
  0x3c   :  { %1639 = vmatmul.mubr.msk.f32.gmra.mrb[26].mxu0 %vm62_vm1, %v55_v47 }
  0x3d   :  { %1641 = vmatprep.mubr.msk.f32.mxu0 %vm62_vm1, %v56_v48 }
  0x40   :  { %1642 = vmatmul.mubr.msk.f32.gmra.mrb[28].mxu0 %vm62_vm1, %v57_v49  ;;  %v646_v49 = vld [vmem:[%s2817_s4 + $0x10] sm:$0xff] }
  0x41   :  { %1644 = vmatprep.mubr.msk.f32.mxu0 %vm62_vm1, %v58_v50  ;;  %v1167_v50 = vld [vmem:[%s2818_s5 + $0x50] sm:$0xff] }
  0x44   :  { %1645 = vmatmul.mubr.msk.f32.gmra.mrb[30].mxu0 %vm62_vm1, %v59_v51 }
  0x45   :  { %900 = vmatprep.mubr.f32.mxu0 %v1901_v33 }
  0x83   :  { %v2125_v20 = vpop.permute.xlu1 %480 }
  0x85   :  { %v471_v38 = vpop.permute.xlu0 %470 }
  0x87   :  { %v2127_v21 = vpop.permute.xlu1 %485 }
  0x89   :  { %v476_v41 = vpop.permute.xlu0 %475 }
  0x8b   :  { %v2132_v23 = vpop.permute.xlu1 %495 }
  0x8d   :  { %v2187_v47 = vpop.permute.xlu0 %490 }
  0x8f   :  { %v2137_v25 = vpop.permute.xlu1 %505 }
  0x93   :  { %v2145_v28 = vpop.permute.xlu1 %515 }
  0x97   :  { %v2150_v30 = vpop.permute.xlu1 %525 }
  0x9b   :  { %v2160_v34 = vpop.permute.xlu1 %535 }
  0x9f   :  { %v2165_v36 = vpop.permute.xlu1 %540 }
  0xa3   :  { %v2173_v40 = vpop.permute.xlu1 %545 }
  0xdb   :  { %v1601_v52 = vpop.f32.mrb[0].mxu0 }
  0xdc   :  { %v229_v53 = vpop.f32.mrb[1].mxu0 }
  0xdd   :  { %388 = vxpose.xlu1.b32.start [1/16] %v229_v53, 128  ;;  %v647_v53 = vld [vmem:[%s2817_s4 + $0x18] sm:$0xff] }
  0xdf   :  { %v1604_v54 = vpop.f32.mrb[2].mxu0 }
  0xe0   :  { %v239_v55 = vpop.f32.mrb[3].mxu0 }
  0xe1   :  { %389 = vxpose.xlu1.b32.cont [2/16] %v1601_v52, 128  ;;  %v2195_v52 = vpop.permute.xlu0 %500 }
  0xe3   :  { %v1607_v56 = vpop.f32.mrb[4].mxu0 }
  0xe4   :  { %v249_v57 = vpop.f32.mrb[5].mxu0 }
  0xe5   :  { %390 = vxpose.xlu1.b32.cont [3/16] %v239_v55, 128 }
  0xe7   :  { %v1610_v58 = vpop.f32.mrb[6].mxu0 }
  0xe8   :  { %v259_v59 = vpop.f32.mrb[7].mxu0 }
  0xe9   :  { %391 = vxpose.xlu1.b32.cont [4/16] %v1604_v54, 128  ;;  %v1168_v54 = vld [vmem:[%s2818_s5 + $0x58] sm:$0xff] }
  0xeb   :  { %v1613_v60 = vpop.f32.mrb[8].mxu0 }
  0xec   :  { %v269_v61 = vpop.f32.mrb[9].mxu0 }
  0xed   :  { %392 = vxpose.xlu1.b32.cont [5/16] %v249_v57, 128  ;;  %v1169_v57 = vld [vmem:[%s2818_s5 + $0x60] sm:$0xff] }
  0xef   :  { %v1616_v62 = vpop.f32.mrb[10].mxu0 }
  0xf0   :  { %v279_v63 = vpop.f32.mrb[11].mxu0 }
  0xf1   :  { %393 = vxpose.xlu1.b32.cont [6/16] %v1607_v56, 128  ;;  %v648_v56 = vld [vmem:[%s2817_s4 + $0x20] sm:$0xff] }
  0xf3   :  { %v1619_v0 = vpop.f32.mrb[12].mxu0 }
  0xf4   :  { %v289_v1 = vpop.f32.mrb[13].mxu0 }
  0xf5   :  { %394 = vxpose.xlu1.b32.cont [7/16] %v259_v59, 128  ;;  %v650_v59 = vld [vmem:[%s2817_s4 + $0x30] sm:$0xff] }
  0xf7   :  { %v1622_v2 = vpop.f32.mrb[14].mxu0 }
  0xf8   :  { %v299_v3 = vpop.f32.mrb[15].mxu0 }
  0xf9   :  { %395 = vxpose.xlu1.b32.cont [8/16] %v1610_v58, 128  ;;  %v2209_v58 = vpop.permute.xlu0 %510 }
  0xfb   :  { %v1625_v4 = vpop.f32.mrb[16].mxu0 }
  0xfc   :  { %v309_v5 = vpop.f32.mrb[17].mxu0 }
  0xfd   :  { %396 = vxpose.xlu1.b32.cont [9/16] %v269_v61, 128  ;;  %420 = vxpose.xlu0.b32.start [1/16] %v309_v5, 128  ;;  %v656_v5 = vld [vmem:[%s2817_s4 + $0x60] sm:$0xff] }
  0xff   :  { %v1628_v6 = vpop.f32.mrb[18].mxu0 }
 0x100   :  { %v319_v7 = vpop.f32.mrb[19].mxu0 }
 0x101   :  { %397 = vxpose.xlu1.b32.cont [10/16] %v1613_v60, 128  ;;  %421 = vxpose.xlu0.b32.cont [2/16] %v1625_v4, 128  ;;  %v1170_v60 = vld [vmem:[%s2818_s5 + $0x68] sm:$0xff] }
 0x103   :  { %v1631_v8 = vpop.f32.mrb[20].mxu0 }
 0x104   :  { %v329_v9 = vpop.f32.mrb[21].mxu0 }
 0x105   :  { %398 = vxpose.xlu1.b32.cont [11/16] %v279_v63, 128  ;;  %422 = vxpose.xlu0.b32.cont [3/16] %v319_v7, 128  ;;  %v652_v63 = vld [vmem:[%s2817_s4 + $0x40] sm:$0xff] }
 0x107   :  { %v1634_v10 = vpop.f32.mrb[22].mxu0 }
 0x108   :  { %v339_v11 = vpop.f32.mrb[23].mxu0 }
 0x109   :  { %399 = vxpose.xlu1.b32.cont [12/16] %v1616_v62, 128  ;;  %423 = vxpose.xlu0.b32.cont [4/16] %v1628_v6, 128  ;;  %v2219_v62 = vpop.permute.xlu0 %520  ;;  %v1173_v6 = vld [vmem:[%s2818_s5 + $0x80] sm:$0xff] }
 0x10b   :  { %v1637_v12 = vpop.f32.mrb[24].mxu0 }
 0x10c   :  { %v349_v13 = vpop.f32.mrb[25].mxu0 }
 0x10d   :  { %400 = vxpose.xlu1.b32.cont [13/16] %v289_v1, 128  ;;  %424 = vxpose.xlu0.b32.cont [5/16] %v329_v9, 128  ;;  %v2233_v4 = vpop.permute.xlu0 %530 }
 0x10f   :  { %v1640_v14 = vpop.f32.mrb[26].mxu0 }
 0x110   :  { %v359_v15 = vpop.f32.mrb[27].mxu0 }
 0x111   :  { %401 = vxpose.xlu1.b32.cont [14/16] %v1619_v0, 128  ;;  %425 = vxpose.xlu0.b32.cont [6/16] %v1631_v8, 128  ;;  %v1171_v0 = vld [vmem:[%s2818_s5 + $0x70] sm:$0xff] }
 0x113   :  { %v1643_v16 = vpop.f32.mrb[28].mxu0 }
 0x114   :  { %v369_v17 = vpop.f32.mrb[29].mxu0 }
 0x115   :  { %402 = vxpose.xlu1.b32.cont [15/16] %v299_v3, 128  ;;  %426 = vxpose.xlu0.b32.cont [7/16] %v339_v11, 128  ;;  %v1172_v3 = vld [vmem:[%s2818_s5 + $0x78] sm:$0xff] }
 0x117   :  { %v1646_v18 = vpop.f32.mrb[30].mxu0 }
 0x118   :  { %v379_v19 = vpop.f32.mrb[31].mxu0 }
 0x119   :  { %403 = vxpose.xlu1.b32.end [16/16] %v1622_v2, 128  ;;  %427 = vxpose.xlu0.b32.cont [8/16] %v1634_v10, 128  ;;  %v654_v2 = vld [vmem:[%s2817_s4 + $0x50] sm:$0xff] }
 0x11a   :  { %v658_v10 = vld [vmem:[%s2817_s4 + $0x70] sm:$0xff] }
 0x11d   :  { %428 = vxpose.xlu0.b32.cont [9/16] %v349_v13, 128 }
 0x121   :  { %429 = vxpose.xlu0.b32.cont [10/16] %v1637_v12, 128  ;;  %v1174_v12 = vld [vmem:[%s2818_s5 + $0x88] sm:$0xff] }
 0x125   :  { %430 = vxpose.xlu0.b32.cont [11/16] %v359_v15, 128 }
 0x129   :  { %431 = vxpose.xlu0.b32.cont [12/16] %v1640_v14, 128 }
 0x12d   :  { %432 = vxpose.xlu0.b32.cont [13/16] %v369_v17, 128  ;;  %v660_v17 = vld [vmem:[%s2817_s4 + $0x80] sm:$0xff] }
 0x131   :  { %433 = vxpose.xlu0.b32.cont [14/16] %v1643_v16, 128 }
 0x135   :  { %434 = vxpose.xlu0.b32.cont [15/16] %v379_v19, 128 }
 0x137   :  { %683 = vperm.xlu1 %1706, %v645_v22  }
 0x139   :  { %435 = vxpose.xlu0.b32.end [16/16] %v1646_v18, 128  ;;  %v1175_v18 = vld [vmem:[%s2818_s5 + $0x90] sm:$0xff] }
 0x13b   :  { %703 = vperm.xlu1 %1706, %v649_v24   ;;  %v1158_v24 = vld [vmem:[%s2818_s5 + $0x8] sm:$0xff] }
 0x13f   :  { %713 = vperm.xlu1 %1706, %v651_v26  }
 0x143   :  { %723 = vperm.xlu1 %1706, %v653_v27   ;;  %v1176_v27 = vld [vmem:[%s2818_s5 + $0x98] sm:$0xff] }
 0x147   :  { %733 = vperm.xlu1 %1706, %v655_v29  }
 0x14b   :  { %743 = vperm.xlu1 %1706, %v657_v31  }
 0x14f   :  { %753 = vperm.xlu1 %1706, %v659_v32  }
 0x153   :  { %1191 = vperm.xlu1 %1706, %v1157_v35  }
 0x157   :  { %1201 = vperm.xlu1 %1706, %v1159_v37   ;;  %v1160_v37 = vld [vmem:[%s2818_s5 + $0x18] sm:$0xff] }
 0x15b   :  { %1211 = vperm.xlu1 %1706, %v1161_v39  }
 0x15d   :  { %v404_v43 = vpop.trf.xlu1 }
 0x15e   :  { %v548_v14 = vadd.f32 %v471_v38, %v404_v43 }
 0x15f   :  { %1221 = vperm.xlu1 %1706, %v1163_v42  }
 0x161   :  { %v405_v48 = vpop.trf.xlu1 }
 0x162   :  { %678 = vperm.xlu0 %1705, %v644_v44   ;;  %v550_v9 = vadd.f32 %v476_v41, %v405_v48  ;;  %v1162_v48 = vld [vmem:[%s2818_s5 + $0x28] sm:$0xff] }
 0x163   :  { %1231 = vperm.xlu1 %1706, %v1165_v46  }
 0x164   :  { %1707 = vtanh.f32 %v550_v9 }
 0x165   :  { %v406_v51 = vpop.trf.xlu1 }
 0x166   :  { %688 = vperm.xlu0 %1705, %v646_v49   ;;  %v552_v32 = vadd.f32 %v2125_v20, %v406_v51  ;;  %v1178_v51 = vld [vmem:[%s2818_s5 + $0xa8] sm:$0xff] }
 0x167   :  { %1241 = vperm.xlu1 %1706, %v1167_v50  }
 0x169   :  { %v407_v55 = vpop.trf.xlu1 }
 0x16a   :  { %693 = vperm.xlu0 %1705, %v647_v53   ;;  %v554_v22 = vadd.f32 %v2127_v21, %v407_v55  ;;  %v1164_v55 = vld [vmem:[%s2818_s5 + $0x38] sm:$0xff] }
 0x16b   :  { %1246 = vperm.xlu1 %1706, %v1168_v54  }
 0x16d   :  { %v2217_v61 = vpop.trf.xlu1 }
 0x16e   :  { %698 = vperm.xlu0 %1705, %v648_v56   ;;  %v1708_v39 = vpop.eup %1707  ;;  %v556_v53 = vadd.f32 %v2187_v47, %v2217_v61 }
 0x16f   :  { %1251 = vperm.xlu1 %1706, %v1169_v57  }
 0x171   :  { %v409_v1 = vpop.trf.xlu1 }
 0x172   :  { %708 = vperm.xlu0 %1705, %v650_v59  }
 0x173   :  { %1256 = vperm.xlu1 %1706, %v1170_v60  }
 0x175   :  { %v2241_v7 = vpop.trf.xlu1 }
 0x176   :  { %718 = vperm.xlu0 %1705, %v652_v63  }
 0x177   :  { %1261 = vperm.xlu1 %1706, %v1171_v0  }
 0x179   :  { %v411_v16 = vpop.trf.xlu1 }
 0x17a   :  { %728 = vperm.xlu0 %1705, %v654_v2   ;;  %v562_v61 = vadd.f32 %v2137_v25, %v411_v16  ;;  %v1166_v2 = vld [vmem:[%s2818_s5 + $0x48] sm:$0xff] }
 0x17b   :  { %1266 = vperm.xlu1 %1706, %v1172_v3  }
 0x17d   :  { %v436_v8 = vpop.trf.xlu0  ;;  %v2263_v29 = vpop.trf.xlu1 }
 0x17e   :  { %738 = vperm.xlu0 %1705, %v656_v5   ;;  %v549_v11 = vadd.f32 %v471_v38, %v436_v8  ;;  %v1177_v38 = vld [vmem:[%s2818_s5 + $0xa0] sm:$0xff]  ;;  %v560_v8 = vadd.f32 %v2195_v52, %v2241_v7 }
 0x17f   :  { %1271 = vperm.xlu1 %1706, %v1173_v6   ;;  %v1180_v6 = vld [vmem:[%s2818_s5 + $0xb8] sm:$0xff] }
 0x180   :  { %1709 = vtanh.f32 %v549_v11  ;;  %v661_v11 = vld [vmem:[%s2817_s4 + $0x88] sm:$0xff] }
 0x181   :  { %v437_v13 = vpop.trf.xlu0  ;;  %v413_v43 = vpop.trf.xlu1 }
 0x182   :  { %v551_v15 = vadd.f32 %v476_v41, %v437_v13  ;;  %748 = vperm.xlu0 %1705, %v658_v10  }
 0x183   :  { %1276 = vperm.xlu1 %1706, %v1174_v12  }
 0x184   :  { %1711 = vtanh.f32 %v551_v15 }
 0x185   :  { %v438_v19 = vpop.trf.xlu0  ;;  %1713 = vtanh.f32 %v548_v14  ;;  %v2287_v57 = vpop.trf.xlu1 }
 0x186   :  { %758 = vperm.xlu0 %1705, %v660_v17   ;;  %v553_v26 = vadd.f32 %v2125_v20, %v438_v19  ;;  %1715 = vtanh.f32 %v554_v22  ;;  %v564_v19 = vadd.f32 %v2209_v58, %v2263_v29 }
 0x187   :  { %1281 = vperm.xlu1 %1706, %v1175_v18   ;;  %v662_v18 = vld [vmem:[%s2817_s4 + $0x90] sm:$0xff] }
 0x188   :  { %1717 = vtanh.f32 %v553_v26 }
 0x189   :  { %v439_v31 = vpop.trf.xlu0  ;;  %v415_v10 = vpop.trf.xlu1 }
 0x18a   :  { %v555_v35 = vadd.f32 %v2127_v21, %v439_v31  ;;  %1196 = vperm.xlu0 %1705, %v1158_v24   ;;  %v1710_v42 = vpop.eup %1709  ;;  %v558_v21 = vadd.f32 %v2132_v23, %v409_v1 }
 0x18b   :  { %1286 = vperm.xlu1 %1706, %v1176_v27   ;;  %v1182_v27 = vld [vmem:[%s2818_s5 + $0xc8] sm:$0xff] }
 0x18c   :  { %1719 = vtanh.f32 %v555_v35  ;;  %v1184_v35 = vld [vmem:[%s2818_s5 + $0xd8] sm:$0xff] }
 0x18d   :  { %v440_v41 = vpop.trf.xlu0  ;;  %1721 = vtanh.f32 %v552_v32  ;;  %v416_v22 = vpop.trf.xlu1 }
 0x18e   :  { %1206 = vperm.xlu0 %1705, %v1160_v37   ;;  %v1712_v20 = vpop.eup %1711  ;;  %v557_v45 = vadd.f32 %v2187_v47, %v440_v41  ;;  %1723 = vtanh.f32 %v558_v21  ;;  %v1179_v47 = vld [vmem:[%s2818_s5 + $0xb0] sm:$0xff]  ;;  %v664_v21 = vld [vmem:[%s2817_s4 + $0xa0] sm:$0xff] }
 0x18f   :  { %1291 = vperm.xlu1 %1706, %v1177_v38   ;;  %v1714_v44 = vpop.eup %1713  ;;  %v1653_v46 = vpack.c.bf16 %v1712_v20, %v1710_v42 }
 0x190   :  { %v1655_v50 = vpack.c.bf16 %v1708_v39, %v1714_v44  ;;  %1725 = vtanh.f32 %v557_v45  ;;  %v1716_v56 = vpop.eup %1715 }
 0x191   :  { %v441_v49 = vpop.trf.xlu0  ;;  %1654 = vmatprep.subr.bf16.mxu0 %v1653_v46  ;;  %1685 = vmatprep.subr.bf16.mxu1 %v1653_v46  ;;  %v417_v39 = vpop.trf.xlu1  ;;  %v1186_v46 = vld [vmem:[%s2818_s5 + $0xe8] sm:$0xff] }
 0x192   :  { %v559_v54 = vadd.f32 %v2132_v23, %v441_v49  ;;  %1216 = vperm.xlu0 %1705, %v1162_v48   ;;  %1656 = vmatpush1.bf16.msra.mxu0 %v1655_v50  ;;  %v1718_v23 = vpop.eup %1717 }
 0x193   :  { %1693 = vmatpush1.bf16.msra.mxu1 %v1655_v50  ;;  %1296 = vperm.xlu1 %1706, %v1178_v51  }
 0x194   :  { %1727 = vtanh.f32 %v559_v54  ;;  %v1188_v54 = vld [vmem:[%s2818_s5 + $0xf8] sm:$0xff] }
 0x195   :  { %v442_v59 = vpop.trf.xlu0  ;;  %1729 = vtanh.f32 %v556_v53  ;;  %v418_v51 = vpop.trf.xlu1 }
 0x196   :  { %v1720_v60 = vpop.eup %1719  ;;  %1226 = vperm.xlu0 %1705, %v1164_v55   ;;  %v561_v0 = vadd.f32 %v2195_v52, %v442_v59  ;;  %1731 = vtanh.f32 %v562_v61  ;;  %v1181_v52 = vld [vmem:[%s2818_s5 + $0xc0] sm:$0xff]  ;;  %v574_v55 = vadd.f32 %v2160_v34, %v417_v39  ;;  %v614_v39 = vld [vmem:[%s2820_s3 + $0x10] sm:$0xff] }
 0x197   :  { %v1722_v63 = vpop.eup %1721  ;;  %1301 = vperm.xlu1 %1706, %v1179_v47   ;;  %v1657_v1 = vpack.c.bf16 %v1720_v60, %v1718_v23  ;;  %v666_v47 = vld [vmem:[%s2817_s4 + $0xb0] sm:$0xff]  ;;  %v572_v60 = vadd.f32 %v2233_v4, %v416_v22 }
 0x198   :  { %v1659_v5 = vpack.c.bf16 %v1716_v56, %v1722_v63  ;;  %1733 = vtanh.f32 %v561_v0  ;;  %v1724_v12 = vpop.eup %1723 }
 0x199   :  { %v443_v3 = vpop.trf.xlu0  ;;  %1658 = vmatprep.subr.bf16.mxu0 %v1657_v1  ;;  %1686 = vmatprep.subr.bf16.mxu1 %v1657_v1  ;;  %v419_v0 = vpop.trf.xlu1 }
 0x19a   :  { %v563_v9 = vadd.f32 %v2137_v25, %v443_v3  ;;  %1236 = vperm.xlu0 %1705, %v1166_v2   ;;  %1660 = vmatpush1.bf16.msra.mxu0 %v1659_v5  ;;  %v1726_v7 = vpop.eup %1725  ;;  %v566_v25 = vadd.f32 %v2145_v28, %v413_v43  ;;  %v568_v43 = vadd.f32 %v2219_v62, %v2287_v57  ;;  %v667_v2 = vld [vmem:[%s2817_s4 + $0xb8] sm:$0xff] }
 0x19b   :  { %1694 = vmatpush1.bf16.msra.mxu1 %v1659_v5  ;;  %1306 = vperm.xlu1 %1706, %v1180_v6   ;;  %v578_v6 = vadd.f32 %v2173_v40, %v419_v0  ;;  %v637_v0 = vld [vmem:[%s2820_s3 + $0xc8] sm:$0xff] }
 0x19c   :  { %1735 = vtanh.f32 %v563_v9 }
 0x19d   :  { %v444_v13 = vpop.trf.xlu0  ;;  %1737 = vtanh.f32 %v560_v8 }
 0x19e   :  { %v1728_v14 = vpop.eup %1727  ;;  %v565_v15 = vadd.f32 %v2209_v58, %v444_v13  ;;  %763 = vperm.xlu0 %1705, %v661_v11   ;;  %1739 = vtanh.f32 %v566_v25  ;;  %v663_v58 = vld [vmem:[%s2817_s4 + $0x98] sm:$0xff]  ;;  %v669_v25 = vld [vmem:[%s2817_s4 + $0xc8] sm:$0xff] }
 0x19f   :  { %v1730_v16 = vpop.eup %1729  ;;  %1311 = vperm.xlu1 %1706, %v1181_v52   ;;  %v1661_v17 = vpack.c.bf16 %v1728_v14, %v1726_v7 }
 0x1a0   :  { %v1663_v26 = vpack.c.bf16 %v1724_v12, %v1730_v16  ;;  %1741 = vtanh.f32 %v565_v15  ;;  %v1732_v29 = vpop.eup %1731  ;;  %v576_v12 = vadd.f32 %v2165_v36, %v418_v51  ;;  %v629_v51 = vld [vmem:[%s2820_s3 + $0x88] sm:$0xff] }
 0x1a1   :  { %v445_v24 = vpop.trf.xlu0  ;;  %1662 = vmatprep.subr.bf16.mxu0 %v1661_v17  ;;  %1687 = vmatprep.subr.bf16.mxu1 %v1661_v17 }
 0x1a2   :  { %v567_v31 = vadd.f32 %v2145_v28, %v445_v24  ;;  %768 = vperm.xlu0 %1705, %v662_v18   ;;  %1664 = vmatpush1.bf16.msra.mxu0 %v1663_v26  ;;  %v1734_v37 = vpop.eup %1733  ;;  %v570_v28 = vadd.f32 %v2150_v30, %v415_v10  ;;  %v668_v10 = vld [vmem:[%s2817_s4 + $0xc0] sm:$0xff] }
 0x1a3   :  { %1695 = vmatpush1.bf16.msra.mxu1 %v1663_v26  ;;  %1316 = vperm.xlu1 %1706, %v1182_v27  }
 0x1a4   :  { %1743 = vtanh.f32 %v567_v31  ;;  %v672_v31 = vld [vmem:[%s2817_s4 + $0xe0] sm:$0xff] }
 0x1a5   :  { %1745 = vtanh.f32 %v564_v19  ;;  %v446_v32 = vpop.trf.xlu0  ;;  %v671_v19 = vld [vmem:[%s2817_s4 + $0xd8] sm:$0xff] }
 0x1a6   :  { %v1736_v38 = vpop.eup %1735  ;;  %v569_v41 = vadd.f32 %v2219_v62, %v446_v32  ;;  %773 = vperm.xlu0 %1705, %v663_v58   ;;  %1747 = vtanh.f32 %v570_v28  ;;  %v665_v62 = vld [vmem:[%s2817_s4 + $0xa8] sm:$0xff]  ;;  %v623_v32 = vld [vmem:[%s2820_s3 + $0x58] sm:$0xff]  ;;  %v624_v28 = vld [vmem:[%s2820_s3 + $0x60] sm:$0xff] }
 0x1a7   :  { %v1738_v42 = vpop.eup %1737  ;;  %1326 = vperm.xlu1 %1706, %v1184_v35   ;;  %v1665_v20 = vpack.c.bf16 %v1736_v38, %v1734_v37  ;;  %v673_v35 = vld [vmem:[%s2817_s4 + $0xe8] sm:$0xff]  ;;  %v674_v38 = vld [vmem:[%s2817_s4 + $0xf0] sm:$0xff] }
 0x1a8   :  { %v1667_v45 = vpack.c.bf16 %v1732_v29, %v1738_v42  ;;  %1749 = vtanh.f32 %v569_v41  ;;  %v1740_v49 = vpop.eup %1739  ;;  %v612_v29 = vld [vmem:[%s2820_s3] sm:$0xff]  ;;  %v613_v37 = vld [vmem:[%s2820_s3 + $0x8] sm:$0xff]  ;;  %v675_v42 = vld [vmem:[%s2817_s4 + $0xf8] sm:$0xff] }
 0x1a9   :  { %v447_v44 = vpop.trf.xlu0  ;;  %1666 = vmatprep.subr.bf16.mxu0 %v1665_v20  ;;  %1688 = vmatprep.subr.bf16.mxu1 %v1665_v20  ;;  %v625_v41 = vld [vmem:[%s2820_s3 + $0x68] sm:$0xff]  ;;  %v615_v20 = vld [vmem:[%s2820_s3 + $0x18] sm:$0xff] }
 0x1aa   :  { %v571_v48 = vadd.f32 %v2150_v30, %v447_v44  ;;  %778 = vperm.xlu0 %1705, %v664_v21   ;;  %1668 = vmatpush1.bf16.msra.mxu0 %v1667_v45  ;;  %v1742_v50 = vpop.eup %1741  ;;  %v626_v21 = vld [vmem:[%s2820_s3 + $0x70] sm:$0xff]  ;;  %v616_v44 = vld [vmem:[%s2820_s3 + $0x20] sm:$0xff] }
 0x1ab   :  { %1696 = vmatpush1.bf16.msra.mxu1 %v1667_v45  ;;  %1336 = vperm.xlu1 %1706, %v1186_v46   ;;  %v627_v45 = vld [vmem:[%s2820_s3 + $0x78] sm:$0xff]  ;;  %v1185_v46 = vld [vmem:[%s2818_s5 + $0xe0] sm:$0xff] }
 0x1ac   :  { %1751 = vtanh.f32 %v571_v48  ;;  %v617_v48 = vld [vmem:[%s2820_s3 + $0x28] sm:$0xff] }
 0x1ad   :  { %1753 = vtanh.f32 %v568_v43  ;;  %v448_v53 = vpop.trf.xlu0  ;;  %v1183_v43 = vld [vmem:[%s2818_s5 + $0xd0] sm:$0xff] }
 0x1ae   :  { %v1744_v30 = vpop.eup %1743  ;;  %v573_v57 = vadd.f32 %v2233_v4, %v448_v53  ;;  %783 = vperm.xlu0 %1705, %v665_v62   ;;  %1755 = vtanh.f32 %v574_v55  ;;  %v1187_v62 = vld [vmem:[%s2818_s5 + $0xf0] sm:$0xff]  ;;  %v1487_v53 = vld [vmem:[#allocation2] sm:$0x1] }
 0x1af   :  { %v1746_v56 = vpop.eup %1745  ;;  %v1669_v59 = vpack.c.bf16 %v1744_v30, %v1742_v50  ;;  %1346 = vperm.xlu1 %1706, %v1188_v54   ;;  %v618_v50 = vld [vmem:[%s2820_s3 + $0x30] sm:$0xff]  ;;  %v619_v54 = vld [vmem:[%s2820_s3 + $0x38] sm:$0xff]  ;;  %v620_v55 = vld [vmem:[%s2820_s3 + $0x40] sm:$0xff] }
 0x1b0   :  { %v1671_v23 = vpack.c.bf16 %v1740_v49, %v1746_v56  ;;  %1757 = vtanh.f32 %v573_v57  ;;  %v1748_v1 = vpop.eup %1747  ;;  %v628_v49 = vld [vmem:[%s2820_s3 + $0x80] sm:$0xff]  ;;  %v630_v30 = vld [vmem:[%s2820_s3 + $0x90] sm:$0xff]  ;;  %v631_v56 = vld [vmem:[%s2820_s3 + $0x98] sm:$0xff] }
 0x1b1   :  { %1670 = vmatprep.subr.bf16.mxu0 %v1669_v59  ;;  %1689 = vmatprep.subr.bf16.mxu1 %v1669_v59  ;;  %v449_v61 = vpop.trf.xlu0  ;;  %v621_v57 = vld [vmem:[%s2820_s3 + $0x48] sm:$0xff]  ;;  %v632_v59 = vld [vmem:[%s2820_s3 + $0xa0] sm:$0xff] }
 0x1b2   :  { %v575_v63 = vadd.f32 %v2160_v34, %v449_v61  ;;  %1672 = vmatpush1.bf16.msra.mxu0 %v1671_v23  ;;  %1697 = vmatpush1.bf16.msra.mxu1 %v1671_v23  ;;  %v1750_v3 = vpop.eup %1749  ;;  %v633_v23 = vld [vmem:[%s2820_s3 + $0xa8] sm:$0xff]  ;;  %v635_v61 = vld [vmem:[%s2820_s3 + $0xb8] sm:$0xff] }
 0x1b3   :  { %788 = vperm.xlu0 %1705, %v666_v47   ;;  %v622_v47 = vld [vmem:[%s2820_s3 + $0x50] sm:$0xff] }
 0x1b4   :  { %1759 = vtanh.f32 %v575_v63  ;;  %v636_v63 = vld [vmem:[%s2820_s3 + $0xc0] sm:$0xff] }
 0x1b5   :  { %1761 = vtanh.f32 %v572_v60  ;;  %v450_v4 = vpop.trf.xlu0  ;;  %v634_v60 = vld [vmem:[%s2820_s3 + $0xb0] sm:$0xff] }
 0x1b6   :  { %v1752_v5 = vpop.eup %1751  ;;  %v577_v34 = vadd.f32 %v2165_v36, %v450_v4  ;;  %1763 = vtanh.f32 %v578_v6  ;;  %v641_v4 = vld [vmem:[%s2820_s3 + $0xe8] sm:$0xff]  ;;  %v643_v6 = vld [vmem:[%s2820_s3 + $0xf8] sm:$0xff] }
 0x1b7   :  { %v1754_v8 = vpop.eup %1753  ;;  %793 = vperm.xlu0 %1705, %v667_v2   ;;  %v1673_v9 = vpack.c.bf16 %v1752_v5, %v1750_v3  ;;  %v639_v2 = vld [vmem:[%s2820_s3 + $0xd8] sm:$0xff]  ;;  %v640_v3 = vld [vmem:[%s2820_s3 + $0xe0] sm:$0xff]  ;;  %v642_v5 = vld [vmem:[%s2820_s3 + $0xf0] sm:$0xff] }
 0x1b8   :  { %v1675_v11 = vpack.c.bf16 %v1748_v1, %v1754_v8  ;;  %1765 = vtanh.f32 %v577_v34  ;;  %v1756_v7 = vpop.eup %1755  ;;  %v638_v1 = vld [vmem:[%s2820_s3 + $0xd0] sm:$0xff] }
 0x1b9   :  { %1674 = vmatprep.subr.bf16.mxu0 %v1673_v9  ;;  %1690 = vmatprep.subr.bf16.mxu1 %v1673_v9  ;;  %v451_v13 = vpop.trf.xlu0  ;;  %v684_v9 = vpop.permute.xlu1 %683 }
 0x1ba   :  { %v579_v52 = vadd.f32 %v2173_v40, %v451_v13  ;;  %1676 = vmatpush1.bf16.msra.mxu0 %v1675_v11  ;;  %1698 = vmatpush1.bf16.msra.mxu1 %v1675_v11  ;;  %v1758_v14 = vpop.eup %1757  ;;  %v670_v40 = vld [vmem:[%s2817_s4 + $0xd0] sm:$0xff] }
 0x1bb   :  { %798 = vperm.xlu0 %1705, %v668_v10  }
 0x1bc   :  { %1767 = vtanh.f32 %v579_v52 }
 0x1bd   :  { %1769 = vtanh.f32 %v576_v12  ;;  %v2518_v11 = vpop.permute.xlu1 %703 }
 0x1be   :  { %v1760_v15 = vpop.eup %1759 }
 0x1bf   :  { %v1762_v36 = vpop.eup %1761  ;;  %803 = vperm.xlu0 %1705, %v669_v25   ;;  %v1677_v16 = vpack.c.bf16 %v1760_v15, %v1758_v14 }
 0x1c0   :  { %v1679_v17 = vpack.c.bf16 %v1756_v7, %v1762_v36  ;;  %v1764_v18 = vpop.eup %1763 }
 0x1c1   :  { %1678 = vmatprep.subr.bf16.mxu0 %v1677_v16  ;;  %1691 = vmatprep.subr.bf16.mxu1 %v1677_v16  ;;  %v2522_v13 = vpop.permute.xlu1 %713 }
 0x1c2   :  { %1680 = vmatpush1.bf16.msra.mxu0 %v1679_v17  ;;  %1699 = vmatpush1.bf16.msra.mxu1 %v1679_v17  ;;  %v1766_v22 = vpop.eup %1765 }
 0x1c3   :  { %808 = vperm.xlu0 %1705, %v670_v40  }
 0x1c5   :  { %v2526_v7 = vpop.permute.xlu1 %723 }
 0x1c6   :  { %v1768_v24 = vpop.eup %1767 }
 0x1c7   :  { %v1770_v26 = vpop.eup %1769  ;;  %813 = vperm.xlu0 %1705, %v671_v19   ;;  %v1681_v27 = vpack.c.bf16 %v1768_v24, %v1766_v22 }
 0x1c8   :  { %v1683_v58 = vpack.c.bf16 %v1764_v18, %v1770_v26 }
 0x1c9   :  { %1682 = vmatprep.subr.bf16.mxu0 %v1681_v27  ;;  %1692 = vmatprep.subr.bf16.mxu1 %v1681_v27  ;;  %v2530_v25 = vpop.permute.xlu1 %733 }
 0x1ca   :  { %1684 = vmatpush1.bf16.msra.mxu0 %v1683_v58  ;;  %1700 = vmatpush1.bf16.msra.mxu1 %v1683_v58 }
 0x1cb   :  { %818 = vperm.xlu0 %1705, %v672_v31  }
 0x1cd   :  { %901 = vmatmul.mubr.f32.vlgmr.msra.gmra.mrb[32].mxu0 %v612_v29  ;;  %967 = vmatmul.mubr.f32.vlgmr.msra.gmra.mrb[0].mxu1 %v623_v32  ;;  %v2534_v15 = vpop.permute.xlu1 %743 }
 0x1ce   :  { %906 = vmatprep.mubr.f32.mxu0 %v1901_v33  ;;  %972 = vmatprep.mubr.f32.mxu1 %v1901_v33 }
 0x1cf   :  { %823 = vperm.xlu0 %1705, %v673_v35  }
 0x1d1   :  { %907 = vmatmul.mubr.f32.gmra.mrb[34].mxu0 %v613_v37  ;;  %973 = vmatmul.mubr.f32.gmra.mrb[2].mxu1 %v624_v28  ;;  %v2538_v16 = vpop.permute.xlu1 %753 }
 0x1d2   :  { %912 = vmatprep.mubr.f32.mxu0 %v1901_v33  ;;  %978 = vmatprep.mubr.f32.mxu1 %v1901_v33 }
 0x1d3   :  { %828 = vperm.xlu0 %1705, %v674_v38  }
 0x1d5   :  { %913 = vmatmul.mubr.f32.gmra.mrb[36].mxu0 %v614_v39  ;;  %979 = vmatmul.mubr.f32.gmra.mrb[4].mxu1 %v625_v41  ;;  %v2542_v17 = vpop.permute.xlu1 %1191 }
 0x1d6   :  { %918 = vmatprep.mubr.f32.mxu0 %v1901_v33  ;;  %984 = vmatprep.mubr.f32.mxu1 %v1901_v33 }
 0x1d7   :  { %833 = vperm.xlu0 %1705, %v675_v42  }
 0x1d9   :  { %919 = vmatmul.mubr.f32.gmra.mrb[38].mxu0 %v615_v20  ;;  %985 = vmatmul.mubr.f32.gmra.mrb[6].mxu1 %v626_v21  ;;  %v2546_v19 = vpop.permute.xlu1 %1201 }
 0x1da   :  { %924 = vmatprep.mubr.f32.mxu0 %v1901_v33  ;;  %990 = vmatprep.mubr.f32.mxu1 %v1901_v33 }
 0x1db   :  { %1321 = vperm.xlu0 %1705, %v1183_v43  }
 0x1dd   :  { %925 = vmatmul.mubr.f32.gmra.mrb[40].mxu0 %v616_v44  ;;  %991 = vmatmul.mubr.f32.gmra.mrb[8].mxu1 %v627_v45  ;;  %v2550_v24 = vpop.permute.xlu1 %1211 }
 0x1de   :  { %930 = vmatprep.mubr.f32.mxu0 %v1901_v33  ;;  %996 = vmatprep.mubr.f32.mxu1 %v1901_v33 }
 0x1df   :  { %1331 = vperm.xlu0 %1705, %v1185_v46  }
 0x1e1   :  { %931 = vmatmul.mubr.f32.gmra.mrb[42].mxu0 %v617_v48  ;;  %997 = vmatmul.mubr.f32.gmra.mrb[10].mxu1 %v628_v49  ;;  %v679_v8 = vpop.permute.xlu0 %678  ;;  %v2554_v27 = vpop.permute.xlu1 %1221 }
 0x1e2   :  { %936 = vmatprep.mubr.f32.mxu0 %v1901_v33  ;;  %1002 = vmatprep.mubr.f32.mxu1 %v1901_v33 }
 0x1e3   :  { %1341 = vperm.xlu0 %1705, %v1187_v62  }
 0x1e5   :  { %937 = vmatmul.mubr.f32.gmra.mrb[44].mxu0 %v618_v50  ;;  %1003 = vmatmul.mubr.f32.gmra.mrb[12].mxu1 %v629_v51  ;;  %v689_v34 = vpop.permute.xlu0 %688  ;;  %v2558_v58 = vpop.permute.xlu1 %1231 }
 0x1e6   :  { %942 = vmatprep.mubr.f32.mxu0 %v1901_v33  ;;  %1008 = vmatprep.mubr.f32.mxu1 %v1901_v33 }
 0x1e7   :  { %1490 = vperm.xlu0 %1705, %v1487_v53  }
 0x1e9   :  { %943 = vmatmul.mubr.f32.gmra.mrb[46].mxu0 %v619_v54  ;;  %1009 = vmatmul.mubr.f32.gmra.mrb[14].mxu1 %v630_v30  ;;  %v2516_v10 = vpop.permute.xlu0 %693  ;;  %v2562_v32 = vpop.permute.xlu1 %1241 }
 0x1ea   :  { %948 = vmatprep.mubr.f32.mxu0 %v1901_v33  ;;  %1014 = vmatprep.mubr.f32.mxu1 %v1901_v33 }
 0x1ed   :  { %949 = vmatmul.mubr.f32.gmra.mrb[48].mxu0 %v620_v55  ;;  %1015 = vmatmul.mubr.f32.gmra.mrb[16].mxu1 %v631_v56  ;;  %v2520_v12 = vpop.permute.xlu0 %698  ;;  %v2566_v37 = vpop.permute.xlu1 %1246 }
 0x1ee   :  { %954 = vmatprep.mubr.f32.mxu0 %v1901_v33  ;;  %1020 = vmatprep.mubr.f32.mxu1 %v1901_v33 }
 0x1f1   :  { %955 = vmatmul.mubr.f32.gmra.mrb[50].mxu0 %v621_v57  ;;  %1021 = vmatmul.mubr.f32.gmra.mrb[18].mxu1 %v632_v59  ;;  %v2524_v52 = vpop.permute.xlu0 %708  ;;  %v2570_v38 = vpop.permute.xlu1 %1251 }
 0x1f2   :  { %960 = vmatprep.mubr.f32.mxu0 %v1901_v33  ;;  %1026 = vmatprep.mubr.f32.mxu1 %v1901_v33 }
 0x1f5   :  { %961 = vmatmul.mubr.f32.gmra.mrb[52].mxu0 %v622_v47  ;;  %1027 = vmatmul.mubr.f32.gmra.mrb[20].mxu1 %v633_v23  ;;  %v2574_v41 = vpop.permute.xlu1 %1256 }
 0x1f6   :  { %1032 = vmatprep.mubr.f32.mxu1 %v1901_v33 }
 0x1f9   :  { %1033 = vmatmul.mubr.f32.gmra.mrb[22].mxu1 %v634_v60  ;;  %v2578_v20 = vpop.permute.xlu1 %1261 }
 0x1fa   :  { %1038 = vmatprep.mubr.f32.mxu1 %v1901_v33 }
 0x1fd   :  { %1039 = vmatmul.mubr.f32.gmra.mrb[24].mxu1 %v635_v61  ;;  %v2590_v55 = vpop.permute.xlu1 %1266 }
 0x1fe   :  { %1044 = vmatprep.mubr.f32.mxu1 %v1901_v33 }
 0x201   :  { %1045 = vmatmul.mubr.f32.gmra.mrb[26].mxu1 %v636_v63 }
 0x202   :  { %1050 = vmatprep.mubr.f32.mxu1 %v1901_v33 }
 0x205   :  { %1051 = vmatmul.mubr.f32.gmra.mrb[28].mxu1 %v637_v0 }
 0x206   :  { %1056 = vmatprep.mubr.f32.mxu1 %v1901_v33 }
 0x209   :  { %1057 = vmatmul.mubr.f32.gmra.mrb[30].mxu1 %v638_v1 }
 0x20a   :  { %1062 = vmatprep.mubr.f32.mxu1 %v1901_v33 }
 0x20d   :  { %1063 = vmatmul.mubr.f32.gmra.mrb[32].mxu1 %v639_v2 }
 0x20e   :  { %1068 = vmatprep.mubr.f32.mxu1 %v1901_v33 }
 0x211   :  { %1069 = vmatmul.mubr.f32.gmra.mrb[34].mxu1 %v640_v3 }
 0x212   :  { %1074 = vmatprep.mubr.f32.mxu1 %v1901_v33 }
 0x215   :  { %1075 = vmatmul.mubr.f32.gmra.mrb[36].mxu1 %v641_v4 }
 0x216   :  { %1080 = vmatprep.mubr.f32.mxu1 %v1901_v33 }
 0x219   :  { %1081 = vmatmul.mubr.f32.gmra.mrb[38].mxu1 %v642_v5 }
 0x21a   :  { %1086 = vmatprep.mubr.f32.mxu1 %v1901_v33  ;;  %v2528_v33 = vpop.permute.xlu0 %718 }
 0x21d   :  { %1087 = vmatmul.mubr.f32.gmra.mrb[40].mxu1 %v643_v6  ;;  %v2604_v6 = vpop.permute.xlu1 %1271 }
 0x21e   :  { %v2532_v14 = vpop.permute.xlu0 %728 }
 0x222   :  { %v2536_v36 = vpop.permute.xlu0 %738 }
 0x226   :  { %v2540_v40 = vpop.permute.xlu0 %748 }
 0x22a   :  { %v2544_v18 = vpop.permute.xlu0 %758 }
 0x22e   :  { %v2548_v22 = vpop.permute.xlu0 %1196 }
 0x232   :  { %v2552_v26 = vpop.permute.xlu0 %1206 }
 0x236   :  { %v2556_v31 = vpop.permute.xlu0 %1216 }
 0x23a   :  { %v2560_v29 = vpop.permute.xlu0 %1226 }
 0x23e   :  { %v2564_v35 = vpop.permute.xlu0 %1236 }
 0x242   :  { %v2568_v28 = vpop.permute.xlu0 %763 }
 0x246   :  { %v2572_v39 = vpop.permute.xlu0 %768 }
 0x24a   :  { %v2576_v42 = vpop.permute.xlu0 %773 }
 0x24e   :  { %v2580_v21 = vpop.permute.xlu0 %778 }
 0x252   :  { %v2592_v56 = vpop.permute.xlu0 %783 }
 0x2a0   :  { %v902_v43 = vpop.f32.mrb[32].mxu0  ;;  %v2582_v44 = vpop.f32.mrb[0].mxu1 }
 0x2a1   :  { %v903_v45 = vadd.f32 %v902_v43, %v679_v8  ;;  %v904_v46 = vpop.f32.mrb[33].mxu0  ;;  %v2584_v48 = vpop.f32.mrb[1].mxu1 }
 0x2a2   :  { %v905_v49 = vadd.f32 %v904_v46, %v679_v8  ;;  %v2606_v8 = vpop.permute.xlu0 %788 }
 0x2a3   :  { %1771 = vtanh.f32 %v903_v45 }
 0x2a4   :  { %v908_v62 = vpop.f32.mrb[34].mxu0  ;;  %v2586_v50 = vpop.f32.mrb[2].mxu1  ;;  %1773 = vtanh.f32 %v905_v49 }
 0x2a5   :  { %v909_v51 = vadd.f32 %v908_v62, %v684_v9  ;;  %v910_v53 = vpop.f32.mrb[35].mxu0  ;;  %v2588_v54 = vpop.f32.mrb[3].mxu1 }
 0x2a6   :  { %v911_v30 = vadd.f32 %v910_v53, %v684_v9 }
 0x2a7   :  { %1775 = vtanh.f32 %v909_v51 }
 0x2a8   :  { %v914_v57 = vpop.f32.mrb[36].mxu0  ;;  %v2594_v59 = vpop.f32.mrb[4].mxu1  ;;  %1777 = vtanh.f32 %v911_v30 }
 0x2a9   :  { %v915_v47 = vadd.f32 %v914_v57, %v689_v34  ;;  %v916_v23 = vpop.f32.mrb[37].mxu0  ;;  %v2596_v60 = vpop.f32.mrb[5].mxu1 }
 0x2aa   :  { %v917_v61 = vadd.f32 %v916_v23, %v689_v34 }
 0x2ab   :  { %1779 = vtanh.f32 %v915_v47 }
 0x2ac   :  { %v920_v63 = vpop.f32.mrb[38].mxu0  ;;  %v2598_v0 = vpop.f32.mrb[6].mxu1  ;;  %1781 = vtanh.f32 %v917_v61 }
 0x2ad   :  { %v921_v1 = vadd.f32 %v920_v63, %v2516_v10  ;;  %v922_v2 = vpop.f32.mrb[39].mxu0  ;;  %v2601_v3 = vpop.f32.mrb[7].mxu1 }
 0x2ae   :  { %v923_v4 = vadd.f32 %v922_v2, %v2516_v10  ;;  %v1772_v5 = vpop.eup %1771 }
 0x2af   :  { %1783 = vtanh.f32 %v921_v1  ;;  %v1774_v9 = vpop.eup %1773  ;;  %v1349_v51 = vmul.f32 %v1772_v5, %v2542_v17 }
 0x2b0   :  { %v926_v34 = vpop.f32.mrb[40].mxu0  ;;  %v2608_v43 = vpop.f32.mrb[8].mxu1  ;;  %1785 = vtanh.f32 %v923_v4  ;;  %v1350_v57 = vmul.f32 %v1774_v9, %v2542_v17 }
 0x2b1   :  { %v1776_v45 = vpop.eup %1775  ;;  %v927_v46 = vadd.f32 %v926_v34, %v2520_v12  ;;  %v928_v49 = vpop.f32.mrb[41].mxu0 }
 0x2b2   :  { %v2611_v62 = vpop.f32.mrb[9].mxu1  ;;  %v1351_v10 = vmul.f32 %v1776_v45, %v2548_v22  ;;  %v929_v53 = vadd.f32 %v928_v49, %v2520_v12  ;;  %v1778_v30 = vpop.eup %1777 }
 0x2b3   :  { %1787 = vtanh.f32 %v927_v46  ;;  %v1352_v23 = vmul.f32 %v1778_v30, %v2548_v22  ;;  %v2625_v17 = vpop.permute.xlu1 %1276  ;;  %v2627_v9 = vpop.permute.xlu0 %793 }
 0x2b4   :  { %v1413_v47 = vadd.f32 %v1351_v10, %v1349_v51  ;;  %v932_v61 = vpop.f32.mrb[42].mxu0  ;;  %v2618_v63 = vpop.f32.mrb[10].mxu1  ;;  %1789 = vtanh.f32 %v929_v53  ;;  %2824 = vst [vmem:[#allocation3_spill] sm:$0xff] %v2625_v17 }
 0x2b5   :  { %v1780_v1 = vpop.eup %1779  ;;  %v933_v2 = vadd.f32 %v932_v61, %v2518_v11  ;;  %v934_v4 = vpop.f32.mrb[43].mxu0  ;;  %v1450_v34 = vadd.f32 %v1352_v23, %v1350_v57 }
 0x2b6   :  { %v2621_v5 = vpop.f32.mrb[11].mxu1  ;;  %v1353_v12 = vmul.f32 %v1780_v1, %v2546_v19  ;;  %v935_v45 = vadd.f32 %v934_v4, %v2518_v11  ;;  %v1782_v46 = vpop.eup %1781 }
 0x2b7   :  { %1791 = vtanh.f32 %v933_v2  ;;  %v1354_v49 = vmul.f32 %v1782_v46, %v2546_v19 }
 0x2b8   :  { %v1414_v22 = vadd.f32 %v1413_v47, %v1353_v12  ;;  %v938_v51 = vpop.f32.mrb[44].mxu0  ;;  %v2630_v10 = vpop.f32.mrb[12].mxu1  ;;  %1793 = vtanh.f32 %v935_v45 }
 0x2b9   :  { %v1784_v53 = vpop.eup %1783  ;;  %v939_v30 = vadd.f32 %v938_v51, %v2524_v52  ;;  %v940_v57 = vpop.f32.mrb[45].mxu0  ;;  %v1451_v11 = vadd.f32 %v1450_v34, %v1354_v49 }
 0x2ba   :  { %v2633_v23 = vpop.f32.mrb[13].mxu1  ;;  %v1355_v61 = vmul.f32 %v1784_v53, %v2552_v26  ;;  %v941_v1 = vadd.f32 %v940_v57, %v2524_v52  ;;  %v1786_v4 = vpop.eup %1785 }
 0x2bb   :  { %1795 = vtanh.f32 %v939_v30  ;;  %v1356_v19 = vmul.f32 %v1786_v4, %v2552_v26  ;;  %v2645_v30 = vpop.permute.xlu1 %1281  ;;  %v969_v26 = vadd.f32 %v2582_v44, %v2530_v25 }
 0x2bc   :  { %v1415_v47 = vadd.f32 %v1414_v22, %v1355_v61  ;;  %v944_v2 = vpop.f32.mrb[46].mxu0  ;;  %v2638_v12 = vpop.f32.mrb[14].mxu1  ;;  %1797 = vtanh.f32 %v941_v1  ;;  %2825 = vst [vmem:[#allocation4_spill] sm:$0xff] %v2645_v30 }
 0x2bd   :  { %v1788_v46 = vpop.eup %1787  ;;  %v945_v45 = vadd.f32 %v944_v2, %v2522_v13  ;;  %v946_v51 = vpop.f32.mrb[47].mxu0  ;;  %v1452_v34 = vadd.f32 %v1451_v11, %v1356_v19 }
 0x2be   :  { %v2641_v17 = vpop.f32.mrb[15].mxu1  ;;  %v1357_v49 = vmul.f32 %v1788_v46, %v2550_v24  ;;  %v947_v52 = vadd.f32 %v946_v51, %v2522_v13  ;;  %v1790_v53 = vpop.eup %1789  ;;  %v971_v46 = vadd.f32 %v2584_v48, %v2530_v25 }
 0x2bf   :  { %v2647_v22 = vpop.permute.xlu0 %798  ;;  %1799 = vtanh.f32 %v945_v45  ;;  %v1358_v61 = vmul.f32 %v1790_v53, %v2550_v24  ;;  %v975_v24 = vadd.f32 %v2586_v50, %v2536_v36 }
 0x2c0   :  { %v1416_v57 = vadd.f32 %v1415_v47, %v1357_v49  ;;  %v950_v1 = vpop.f32.mrb[48].mxu0  ;;  %v2652_v4 = vpop.f32.mrb[16].mxu1  ;;  %1801 = vtanh.f32 %v947_v52 }
 0x2c1   :  { %v1792_v11 = vpop.eup %1791  ;;  %v951_v19 = vadd.f32 %v950_v1, %v2528_v33  ;;  %v952_v13 = vpop.f32.mrb[49].mxu0  ;;  %v1453_v45 = vadd.f32 %v1452_v34, %v1358_v61 }
 0x2c2   :  { %v2655_v2 = vpop.f32.mrb[17].mxu1  ;;  %v1359_v51 = vmul.f32 %v1792_v11, %v2556_v31  ;;  %v953_v44 = vadd.f32 %v952_v13, %v2528_v33  ;;  %v1794_v47 = vpop.eup %1793  ;;  %v977_v11 = vadd.f32 %v2588_v54, %v2536_v36 }
 0x2c3   :  { %1803 = vtanh.f32 %v951_v19  ;;  %v1360_v52 = vmul.f32 %v1794_v47, %v2556_v31  ;;  %v2673_v31 = vpop.permute.xlu0 %803  ;;  %v981_v47 = vadd.f32 %v2594_v59, %v2534_v15 }
 0x2c4   :  { %1805 = vtanh.f32 %v969_v26  ;;  %v1417_v49 = vadd.f32 %v1416_v57, %v1359_v51  ;;  %v956_v53 = vpop.f32.mrb[50].mxu0  ;;  %v2664_v1 = vpop.f32.mrb[18].mxu1 }
 0x2c5   :  { %v1796_v30 = vpop.eup %1795  ;;  %1807 = vtanh.f32 %v953_v44  ;;  %v957_v25 = vadd.f32 %v956_v53, %v2526_v7  ;;  %v958_v48 = vpop.f32.mrb[51].mxu0  ;;  %v1454_v33 = vadd.f32 %v1453_v45, %v1360_v52 }
 0x2c6   :  { %v2667_v34 = vpop.f32.mrb[19].mxu1  ;;  %1809 = vtanh.f32 %v971_v46  ;;  %v1361_v26 = vmul.f32 %v1796_v30, %v2554_v27  ;;  %v959_v61 = vadd.f32 %v958_v48, %v2526_v7  ;;  %v1798_v50 = vpop.eup %1797 }
 0x2c7   :  { %v2671_v57 = vpop.permute.xlu1 %1286  ;;  %1811 = vtanh.f32 %v957_v25  ;;  %v1362_v13 = vmul.f32 %v1798_v50, %v2554_v27  ;;  %v983_v27 = vadd.f32 %v2596_v60, %v2534_v15  ;;  %v993_v60 = vadd.f32 %v2608_v43, %v2538_v16 }
 0x2c8   :  { %1813 = vtanh.f32 %v975_v24  ;;  %v1418_v19 = vadd.f32 %v1417_v49, %v1361_v26  ;;  %v962_v51 = vpop.f32.mrb[52].mxu0  ;;  %v2678_v46 = vpop.f32.mrb[20].mxu1  ;;  %v987_v49 = vadd.f32 %v2598_v0, %v2540_v40 }
 0x2c9   :  { %v1800_v45 = vpop.eup %1799  ;;  %1815 = vtanh.f32 %v959_v61  ;;  %v963_v7 = vadd.f32 %v962_v51, %v2532_v14  ;;  %v964_v30 = vpop.f32.mrb[53].mxu0  ;;  %v1455_v24 = vadd.f32 %v1454_v33, %v1362_v13 }
 0x2ca   :  { %v2681_v44 = vpop.f32.mrb[21].mxu1  ;;  %v1363_v52 = vmul.f32 %v1800_v45, %v2560_v29  ;;  %v965_v36 = vadd.f32 %v964_v30, %v2532_v14  ;;  %v1802_v54 = vpop.eup %1801  ;;  %v989_v14 = vadd.f32 %v2601_v3, %v2540_v40  ;;  %v999_v40 = vadd.f32 %v2618_v63, %v2544_v18 }
 0x2cb   :  { %1817 = vtanh.f32 %v963_v7  ;;  %v1364_v25 = vmul.f32 %v1802_v54, %v2560_v29  ;;  %v2694_v33 = vpop.permute.xlu0 %808  ;;  %v2703_v50 = vpop.permute.xlu1 %1291  ;;  %v1001_v45 = vadd.f32 %v2621_v5, %v2544_v18  ;;  %v1011_v18 = vadd.f32 %v2638_v12, %v2572_v39 }
 0x2cc   :  { %1819 = vtanh.f32 %v977_v11  ;;  %v1419_v53 = vadd.f32 %v1418_v19, %v1363_v52  ;;  %v2692_v48 = vpop.f32.mrb[22].mxu1  ;;  %v995_v11 = vadd.f32 %v2611_v62, %v2538_v16  ;;  %v1005_v16 = vadd.f32 %v2630_v10, %v2568_v28 }
 0x2cd   :  { %v1804_v59 = vpop.eup %1803  ;;  %1821 = vtanh.f32 %v965_v36  ;;  %v2698_v26 = vpop.f32.mrb[23].mxu1  ;;  %v1456_v0 = vadd.f32 %v1455_v24, %v1364_v25 }
 0x2ce   :  { %v1806_v15 = vpop.eup %1805  ;;  %1823 = vtanh.f32 %v981_v47  ;;  %v1365_v61 = vmul.f32 %v1804_v59, %v2558_v58  ;;  %v1019_v59 = vadd.f32 %v2655_v2, %v2576_v42 }
 0x2cf   :  { %v1808_v29 = vpop.eup %1807  ;;  %1825 = vtanh.f32 %v983_v27  ;;  %v2719_v24 = vpop.permute.xlu0 %813  ;;  %v1013_v27 = vadd.f32 %v2641_v17, %v2572_v39  ;;  %v1371_v25 = vmul.f32 %v1806_v15, %v2566_v37  ;;  %v1023_v39 = vadd.f32 %v2664_v1, %v2580_v21 }
 0x2d0   :  { %v1810_v19 = vpop.eup %1809  ;;  %1827 = vtanh.f32 %v987_v49  ;;  %v1420_v3 = vadd.f32 %v1419_v53, %v1365_v61  ;;  %v1366_v13 = vmul.f32 %v1808_v29, %v2558_v58  ;;  %v2710_v51 = vpop.f32.mrb[24].mxu1  ;;  %v1007_v58 = vadd.f32 %v2633_v23, %v2568_v28 }
 0x2d1   :  { %v1812_v43 = vpop.eup %1811  ;;  %1829 = vtanh.f32 %v989_v14  ;;  %v2714_v7 = vpop.f32.mrb[25].mxu1  ;;  %v1017_v28 = vadd.f32 %v2652_v4, %v2576_v42  ;;  %v1372_v29 = vmul.f32 %v1810_v19, %v2566_v37  ;;  %v1025_v42 = vadd.f32 %v2667_v34, %v2580_v21 }
 0x2d2   :  { %v1814_v30 = vpop.eup %1813  ;;  %1831 = vtanh.f32 %v993_v60  ;;  %v1457_v62 = vadd.f32 %v1456_v0, %v1366_v13  ;;  %v1367_v63 = vmul.f32 %v1812_v43, %v2564_v35  ;;  %v2728_v54 = vpop.permute.xlu1 %1296  ;;  %v1031_v19 = vadd.f32 %v2681_v44, %v2592_v56 }
 0x2d3   :  { %v1816_v47 = vpop.eup %1815  ;;  %1833 = vtanh.f32 %v995_v11  ;;  %v2745_v61 = vpop.permute.xlu0 %818  ;;  %v1373_v15 = vmul.f32 %v1814_v30, %v2570_v38  ;;  %v1035_v30 = vadd.f32 %v2692_v48, %v2606_v8 }
 0x2d4   :  { %1835 = vtanh.f32 %v999_v40  ;;  %v1421_v5 = vadd.f32 %v1420_v3, %v1367_v63  ;;  %v1368_v52 = vmul.f32 %v1816_v47, %v2564_v35  ;;  %v2726_v36 = vpop.f32.mrb[26].mxu1 }
 0x2d5   :  { %v1818_v10 = vpop.eup %1817  ;;  %1837 = vtanh.f32 %v1001_v45  ;;  %v2732_v49 = vpop.f32.mrb[27].mxu1 }
 0x2d6   :  { %v1820_v53 = vpop.eup %1819  ;;  %1839 = vtanh.f32 %v1005_v16  ;;  %v1458_v23 = vadd.f32 %v1457_v62, %v1368_v52  ;;  %v1369_v12 = vmul.f32 %v1818_v10, %v2562_v32  ;;  %v2753_v13 = vpop.permute.xlu1 %1301  ;;  %v1043_v10 = vadd.f32 %v2714_v7, %v2627_v9 }
 0x2d7   :  { %v1822_v35 = vpop.eup %1821  ;;  %1841 = vtanh.f32 %v1007_v58  ;;  %v1374_v43 = vmul.f32 %v1820_v53, %v2570_v38  ;;  %v1037_v38 = vadd.f32 %v2698_v26, %v2606_v8  ;;  %v2767_v48 = vpop.permute.xlu0 %823  ;;  %v1047_v53 = vadd.f32 %v2726_v36, %v2647_v22 }
 0x2d8   :  { %v1824_v14 = vpop.eup %1823  ;;  %1843 = vtanh.f32 %v1011_v18  ;;  %v1422_v17 = vadd.f32 %v1421_v5, %v1369_v12  ;;  %v1370_v60 = vmul.f32 %v1822_v35, %v2562_v32  ;;  %v2743_v0 = vpop.f32.mrb[28].mxu1  ;;  %v1029_v32 = vadd.f32 %v2678_v46, %v2592_v56 }
 0x2d9   :  { %v1826_v4 = vpop.eup %1825  ;;  %1845 = vtanh.f32 %v1013_v27  ;;  %v1054_v2 = vpop.f32.mrb[29].mxu1  ;;  %v1375_v37 = vmul.f32 %v1824_v14, %v2574_v41  ;;  %v1041_v18 = vadd.f32 %v2710_v51, %v2627_v9  ;;  %v1049_v7 = vadd.f32 %v2732_v49, %v2647_v22  ;;  %v2827_v49 = vld [vmem:[#allocation4_spill] sm:$0xff] }
 0x2da   :  { %v1828_v11 = vpop.eup %1827  ;;  %1847 = vtanh.f32 %v1017_v28  ;;  %v1423_v1 = vadd.f32 %v1422_v17, %v1371_v25  ;;  %v1459_v40 = vadd.f32 %v1458_v23, %v1370_v60  ;;  %v1376_v62 = vmul.f32 %v1826_v4, %v2574_v41  ;;  %v2775_v23 = vpop.permute.xlu1 %1306 }
 0x2db   :  { %v1830_v3 = vpop.eup %1829  ;;  %1849 = vtanh.f32 %v1019_v59  ;;  %v1377_v63 = vmul.f32 %v1828_v11, %v2578_v20 }
 0x2dc   :  { %v1832_v21 = vpop.eup %1831  ;;  %1851 = vtanh.f32 %v1023_v39  ;;  %v1424_v34 = vadd.f32 %v1423_v1, %v1373_v15  ;;  %v1460_v45 = vadd.f32 %v1459_v40, %v1372_v29  ;;  %v1058_v46 = vpop.f32.mrb[30].mxu1  ;;  %v1378_v52 = vmul.f32 %v1830_v3, %v2578_v20  ;;  %v2826_v39 = vld [vmem:[#allocation3_spill] sm:$0xff] }
 0x2dd   :  { %v1834_v16 = vpop.eup %1833  ;;  %1853 = vtanh.f32 %v1025_v42  ;;  %v1060_v47 = vpop.f32.mrb[31].mxu1  ;;  %v1379_v41 = vmul.f32 %v1832_v21, %v2590_v55  ;;  %v1055_v15 = vadd.f32 %v1054_v2, %v2673_v31 }
 0x2de   :  { %v1836_v58 = vpop.eup %1835  ;;  %v1425_v56 = vadd.f32 %v1424_v34, %v1375_v37  ;;  %1855 = vtanh.f32 %v1029_v32  ;;  %v1461_v44 = vadd.f32 %v1460_v45, %v1374_v43  ;;  %v1380_v12 = vmul.f32 %v1834_v16, %v2590_v55  ;;  %v829_v1 = vpop.permute.xlu0 %828 }
 0x2df   :  { %v1838_v5 = vpop.eup %1837  ;;  %1857 = vtanh.f32 %v1031_v19  ;;  %v1381_v20 = vmul.f32 %v1836_v58, %v2604_v6  ;;  %v1053_v55 = vadd.f32 %v2743_v0, %v2673_v31  ;;  %v1061_v0 = vadd.f32 %v1060_v47, %v2694_v33  ;;  %v2790_v21 = vpop.permute.xlu1 %1311 }
 0x2e0   :  { %v1840_v8 = vpop.eup %1839  ;;  %v1426_v26 = vadd.f32 %v1425_v56, %v1377_v63  ;;  %v1462_v27 = vadd.f32 %v1461_v44, %v1376_v62  ;;  %1859 = vtanh.f32 %v1035_v30  ;;  %v1064_v28 = vpop.f32.mrb[32].mxu1  ;;  %v1382_v36 = vmul.f32 %v1838_v5, %v2604_v6 }
 0x2e1   :  { %v1842_v51 = vpop.eup %1841  ;;  %1861 = vtanh.f32 %v1037_v38  ;;  %v1066_v35 = vpop.f32.mrb[33].mxu1  ;;  %v1383_v17 = vmul.f32 %v1840_v8, %v2826_v39  ;;  %v1059_v6 = vadd.f32 %v1058_v46, %v2694_v33  ;;  %v1065_v34 = vadd.f32 %v1064_v28, %v2719_v24 }
 0x2e2   :  { %v1844_v25 = vpop.eup %1843  ;;  %v1427_v59 = vadd.f32 %v1426_v26, %v1379_v41  ;;  %v1463_v9 = vadd.f32 %v1462_v27, %v1378_v52  ;;  %1863 = vtanh.f32 %v1041_v18  ;;  %v1384_v22 = vmul.f32 %v1842_v51, %v2826_v39  ;;  %v834_v41 = vpop.permute.xlu0 %833 }
 0x2e3   :  { %v1846_v14 = vpop.eup %1845  ;;  %1865 = vtanh.f32 %v1043_v10  ;;  %v1385_v32 = vmul.f32 %v1844_v25, %v2827_v49  ;;  %v1067_v16 = vadd.f32 %v1066_v35, %v2719_v24 }
 0x2e4   :  { %v1848_v60 = vpop.eup %1847  ;;  %v1428_v4 = vadd.f32 %v1427_v59, %v1381_v20  ;;  %v1464_v29 = vadd.f32 %v1463_v9, %v1380_v12  ;;  %1867 = vtanh.f32 %v1047_v53  ;;  %v1070_v42 = vpop.f32.mrb[34].mxu1  ;;  %v1386_v31 = vmul.f32 %v1846_v14, %v2827_v49 }
 0x2e5   :  { %v1850_v11 = vpop.eup %1849  ;;  %v1072_v40 = vpop.f32.mrb[35].mxu1  ;;  %1869 = vtanh.f32 %v1049_v7  ;;  %v1387_v2 = vmul.f32 %v1848_v60, %v2671_v57  ;;  %v1071_v47 = vadd.f32 %v1070_v42, %v2745_v61 }
 0x2e6   :  { %v1852_v3 = vpop.eup %1851  ;;  %v1429_v43 = vadd.f32 %v1428_v4, %v1383_v17  ;;  %v1465_v37 = vadd.f32 %v1464_v29, %v1382_v36  ;;  %1871 = vtanh.f32 %v1053_v55  ;;  %v1388_v33 = vmul.f32 %v1850_v11, %v2671_v57  ;;  %v1317_v12 = vpop.permute.xlu1 %1316 }
 0x2e7   :  { %v1854_v19 = vpop.eup %1853  ;;  %1873 = vtanh.f32 %v1055_v15  ;;  %v1389_v38 = vmul.f32 %v1852_v3, %v2703_v50  ;;  %v1073_v5 = vadd.f32 %v1072_v40, %v2745_v61  ;;  %v1322_v60 = vpop.permute.xlu0 %1321 }
 0x2e8   :  { %v1856_v45 = vpop.eup %1855  ;;  %v1430_v30 = vadd.f32 %v1429_v43, %v1385_v32  ;;  %v1466_v46 = vadd.f32 %v1465_v37, %v1384_v22  ;;  %v1076_v62 = vpop.f32.mrb[36].mxu1  ;;  %1875 = vtanh.f32 %v1059_v6  ;;  %v1390_v24 = vmul.f32 %v1854_v19, %v2703_v50 }
 0x2e9   :  { %v1858_v63 = vpop.eup %1857  ;;  %v1078_v58 = vpop.f32.mrb[37].mxu1  ;;  %1877 = vtanh.f32 %v1061_v0  ;;  %v1391_v10 = vmul.f32 %v1856_v45, %v2728_v54  ;;  %v1077_v57 = vadd.f32 %v1076_v62, %v2767_v48 }
 0x2ea   :  { %v1860_v56 = vpop.eup %1859  ;;  %v1431_v44 = vadd.f32 %v1430_v30, %v1387_v2  ;;  %v1467_v18 = vadd.f32 %v1466_v46, %v1386_v31  ;;  %1879 = vtanh.f32 %v1065_v34  ;;  %v1079_v53 = vadd.f32 %v1078_v58, %v2767_v48  ;;  %v1327_v32 = vpop.permute.xlu1 %1326 }
 0x2eb   :  { %v1862_v52 = vpop.eup %1861  ;;  %1881 = vtanh.f32 %v1067_v16  ;;  %v1392_v61 = vmul.f32 %v1858_v63, %v2728_v54  ;;  %v1393_v20 = vmul.f32 %v1860_v56, %v2753_v13  ;;  %v1332_v30 = vpop.permute.xlu0 %1331 }
 0x2ec   :  { %v1864_v8 = vpop.eup %1863  ;;  %v1432_v26 = vadd.f32 %v1431_v44, %v1389_v38  ;;  %v1468_v27 = vadd.f32 %v1467_v18, %v1388_v33  ;;  %v1082_v28 = vpop.f32.mrb[38].mxu1  ;;  %1883 = vtanh.f32 %v1071_v47  ;;  %v1394_v14 = vmul.f32 %v1862_v52, %v2753_v13 }
 0x2ed   :  { %v1866_v51 = vpop.eup %1865  ;;  %v1083_v50 = vadd.f32 %v1082_v28, %v829_v1  ;;  %v1084_v35 = vpop.f32.mrb[39].mxu1  ;;  %1885 = vtanh.f32 %v1073_v5  ;;  %v1395_v17 = vmul.f32 %v1864_v8, %v2775_v23 }
 0x2ee   :  { %v1868_v25 = vpop.eup %1867  ;;  %v1433_v59 = vadd.f32 %v1432_v26, %v1391_v10  ;;  %v1469_v9 = vadd.f32 %v1468_v27, %v1390_v24  ;;  %v1085_v7 = vadd.f32 %v1084_v35, %v829_v1  ;;  %1887 = vtanh.f32 %v1077_v57  ;;  %v1337_v47 = vpop.permute.xlu1 %1336 }
 0x2ef   :  { %v1870_v36 = vpop.eup %1869  ;;  %1889 = vtanh.f32 %v1079_v53  ;;  %v1396_v4 = vmul.f32 %v1866_v51, %v2775_v23  ;;  %v1397_v29 = vmul.f32 %v1868_v25, %v2790_v21  ;;  %v1342_v26 = vpop.permute.xlu0 %1341 }
 0x2f0   :  { %v1470_v48 = vadd.f32 %v1469_v9, %v1392_v61  ;;  %v1434_v39 = vadd.f32 %v1433_v59, %v1393_v20  ;;  %v1088_v54 = vpop.f32.mrb[40].mxu1  ;;  %v1872_v55 = vpop.eup %1871  ;;  %1891 = vtanh.f32 %v1083_v50  ;;  %v1398_v43 = vmul.f32 %v1870_v36, %v2790_v21 }
 0x2f1   :  { %v1089_v15 = vadd.f32 %v1088_v54, %v834_v41  ;;  %v1090_v42 = vpop.f32.mrb[41].mxu1  ;;  %v1874_v11 = vpop.eup %1873  ;;  %1893 = vtanh.f32 %v1085_v7  ;;  %v1399_v37 = vmul.f32 %v1872_v55, %v1317_v12  ;;  %v1493_v59 = vlaneseq }
 0x2f2   :  { %v1471_v1 = vadd.f32 %v1470_v48, %v1394_v14  ;;  %v1435_v13 = vadd.f32 %v1434_v39, %v1395_v17  ;;  %v1091_v22 = vadd.f32 %v1090_v42, %v834_v41  ;;  %v1876_v49 = vpop.eup %1875  ;;  %v1400_v2 = vmul.f32 %v1874_v11, %v1317_v12  ;;  %v1347_v61 = vpop.permute.xlu1 %1346 }
 0x2f3   :  { %1895 = vtanh.f32 %v1089_v15  ;;  %v1878_v6 = vpop.eup %1877  ;;  %v1401_v34 = vmul.f32 %v1876_v49, %v1322_v60  ;;  %v1494_v39 = vshrl.u32 %v1493_v59, 7  ;;  %v1491_v42 = vpop.permute.xlu0 %1490  ;;  %v1902_v11 = vmov 1966171168  }
 0x2f4   :  { %v1472_v40 = vadd.f32 %v1471_v1, %v1396_v4  ;;  %v1436_v3 = vadd.f32 %v1435_v13, %v1397_v29  ;;  %v1880_v23 = vpop.eup %1879  ;;  %1897 = vtanh.f32 %v1091_v22  ;;  %v1402_v63 = vmul.f32 %v1878_v6, %v1322_v60 }
 0x2f5   :  { %v1882_v0 = vpop.eup %1881  ;;  %v1403_v33 = vmul.f32 %v1880_v23, %v1327_v32  ;;  %v1495_v4 = vsub.s32 0, %v1494_v39  ;;  %v1505_v1 = vunpack.c.l.s4 %v1902_v11  ;;  %vm1521_vm4 = vcmp.lt.s32.totalorder %v1493_v59, 256 }
 0x2f6   :  { %v1473_v19 = vadd.f32 %v1472_v40, %v1398_v43  ;;  %v1437_v31 = vadd.f32 %v1436_v3, %v1399_v37  ;;  %v1884_v45 = vpop.eup %1883  ;;  %v1404_v44 = vmul.f32 %v1882_v0, %v1327_v32 }
 0x2f7   :  { %v1886_v46 = vpop.eup %1885  ;;  %v1405_v18 = vmul.f32 %v1884_v45, %v1332_v30  ;;  %v1496_v49 = vrot.slane %v1491_v42, %v1495_v4  ;;  %v1506_v40 = vunpack.c.0.s8 %v1505_v1 }
 0x2f8   :  { %v1474_v16 = vadd.f32 %v1473_v19, %v1400_v2  ;;  %v1438_v62 = vadd.f32 %v1437_v31, %v1401_v34  ;;  %v1888_v38 = vpop.eup %1887  ;;  %v1406_v10 = vmul.f32 %v1886_v46, %v1332_v30 }
 0x2f9   :  { %v1890_v58 = vpop.eup %1889  ;;  %v1407_v57 = vmul.f32 %v1888_v38, %v1337_v47  ;;  %v1509_v0 = vsub.s32 %v1506_v40, %v1494_v39 }
 0x2fa   :  { %v1475_v56 = vadd.f32 %v1474_v16, %v1402_v63  ;;  %v1439_v21 = vadd.f32 %v1438_v62, %v1403_v33  ;;  %v1892_v5 = vpop.eup %1891  ;;  %v1408_v28 = vmul.f32 %v1890_v58, %v1337_v47 }
 0x2fb   :  { %v1894_v52 = vpop.eup %1893  ;;  %v1409_v51 = vmul.f32 %v1892_v5, %v1342_v26 }
 0x2fc   :  { %v1476_v41 = vadd.f32 %v1475_v56, %v1404_v44  ;;  %v1440_v24 = vadd.f32 %v1439_v21, %v1405_v18  ;;  %v1410_v35 = vmul.f32 %v1894_v52, %v1342_v26 }
 0x2fd   :  { %v1896_v8 = vpop.eup %1895 }
 0x2fe   :  { %v1477_v27 = vadd.f32 %v1476_v41, %v1406_v10  ;;  %v1441_v53 = vadd.f32 %v1440_v24, %v1407_v57  ;;  %v1898_v12 = vpop.eup %1897  ;;  %v1411_v25 = vmul.f32 %v1896_v8, %v1347_v61 }
 0x2ff   :  { %v1412_v14 = vmul.f32 %v1898_v12, %v1347_v61 }
 0x300   :  { %v1478_v20 = vadd.f32 %v1477_v27, %v1408_v28  ;;  %v1442_v50 = vadd.f32 %v1441_v53, %v1409_v51 }
 0x302   :  { %v1479_v9 = vadd.f32 %v1478_v20, %v1410_v35  ;;  %v1443_v7 = vadd.f32 %v1442_v50, %v1411_v25 }
 0x304   :  { %v1444_v36 = vrot.slane %v1443_v7, 4  ;;  %v1480_v48 = vadd.f32 %v1479_v9, %v1412_v14 }
 0x306   :  { %v1445_v17 = vadd.f32 %v1444_v36, %v1443_v7  ;;  %v1481_v54 = vrot.slane %v1480_v48, 4 }
 0x308   :  { %v1446_v55 = vrot.slane %v1445_v17, 2  ;;  %v1482_v60 = vadd.f32 %v1481_v54, %v1480_v48 }
 0x30a   :  { %v1447_v29 = vadd.f32 %v1446_v55, %v1445_v17  ;;  %v1483_v15 = vrot.slane %v1482_v60, 2 }
 0x30c   :  { %v1448_v13 = vrot.slane %v1447_v29, 1  ;;  %v1484_v22 = vadd.f32 %v1483_v15, %v1482_v60 }
 0x30e   :  { %v1449_v32 = vadd.f32 %v1448_v13, %v1447_v29  ;;  %v1485_v6 = vrot.slane %v1484_v22, 1 }
 0x310   :  { %v1497_v3 = vadd.f32 %v1496_v49, %v1449_v32  ;;  %v1486_v43 = vadd.f32 %v1485_v6, %v1484_v22 }
 0x312   :  { %v1499_v37 = vmax.f32 %v1497_v3, 0.0  ;;  %v1498_v23 = vadd.f32 %v1496_v49, %v1486_v43 }
 0x314   :  { %v1500_v19 = vmax.f32 %v1498_v23, 0.0 }
 0x316   :  { %v1503_v31 = vcombine.low %v1499_v37, %v1500_v19 }
 0x318   :  { %v1510_v2 = vrot.slane %v1503_v31, %v1509_v0 }
 0x31a   :  { %v1517_v34 = vrot.slane %v1510_v2, %v1509_v0 }
 0x31c   :  { %1523 = vst.msk [vmem:[%s2821_s7] sm:$0x3] %vm1521_vm4, %v1517_v34 }

</bundles_post_ra>
